<compile_context>
chip_gen: v5e
topology: v5e:2x2
jax: 0.10.0
libtpu: 0.0.40
codegen_flags: <defaults>
</compile_context>

<pallas_src>
import math
import functools

import jax
import jax.numpy as jnp
from jax.experimental import pallas as pl
from jax.experimental.pallas import tpu as pltpu


# ------------------------- deterministic camera util --------------------------
# TODO(synk): utils.Camera is an external dependency of the original module; replaced
# by a deterministic pinhole projection with fixed intrinsics (plain JAX outside the
# kernel, exactly like the module calls camera(points, [H, W, 1])).
class PinholeCamera:
    def __init__(self, fx, fy, shift):
        self.fx, self.fy, self.shift = float(fx), float(fy), float(shift)

    def __call__(self, points, size):
        H, W, _ = size
        z = jnp.abs(points[..., 2]) + 2.0
        u = points[..., 0] / z * self.fx * H + 0.5 * (H - 1) + self.shift
        v = points[..., 1] / z * self.fy * W + 0.5 * (W - 1) - self.shift
        return jnp.stack([u, v], axis=-1)  # (B, K, 2) pixel coordinates


# ------------------------------ fused Pallas kernel ----------------------------
def _fused_deform_mha_kernel(q_ref, pix_ref, feat_ref, coord_ref, hmask_ref,
                             w_ow_ref, b_ow_ref, w_fused_ref, b_final_ref,
                             out_ref, *, H, W, n_heads, n_points):
    cam = pl.program_id(1)
    HW = H * W
    so_cols = 2 * n_heads * n_points

    # Static affine constants (Python floats -> immediates).  These collapse the
    # module's normalize -> grid_sample denormalize chain and express the bound test
    # on the raw pixel coordinate.  The H/W pairing reproduces the original module's
    # quirk verbatim (x normalized by H-1 but indexing width, bound vs [0, H], ...).
    rx = (W - 1.0) / (H - 1.0)            # pixel-x -> column index
    ry = (H - 1.0) / (W - 1.0)            # pixel-y -> row index
    x_lo, x_hi = (H - 1.0) / 2.0, (H * H - 1.0) / 2.0
    y_lo, y_hi = (W - 1.0) / 2.0, (W * W - 1.0) / 2.0
    inv_h, inv_w = 1.0 / H, 1.0 / W

    q = q_ref[0]                                        # (K, D)   f32
    pix = pix_ref[0, 0]                                 # (K, 2)   f32
    feat = feat_ref[0, 0].astype(jnp.float32)           # (HW, D)  bf16 -> f32 once
    K, D = q.shape

    px = pix[:, 0:1]                                    # (K, 1)
    py = pix[:, 1:2]                                    # (K, 1)
    coords = coord_ref[...]                             # (2, HW) host-precomputed
    colx = coords[0:1, :]                               # (1, HW)
    coly = coords[1:2, :]                               # (1, HW)

    def sample_rows(pc0, pc1):
        # F.grid_sample (bilinear, align_corners=True, zeros padding) as a dense
        # (K, HW) weight matrix via separable "hat" weights, plus the module's
        # in-bounds mask (returned separately, folded in multiplicatively).
        bnd = ((pc0 >= x_lo) & (pc0 <= x_hi) &
               (pc1 >= y_lo) & (pc1 <= y_hi)).astype(jnp.float32)
        ix = pc0 * rx
        iy = pc1 * ry
        wx = jnp.maximum(0.0, 1.0 - jnp.abs(colx - ix))
        wy = jnp.maximum(0.0, 1.0 - jnp.abs(coly - iy))
        return wx * wy, bnd

    # ---- _project: sample the feature map at the camera pixel coordinate ----
    s0, bnd0 = sample_rows(px, py)
    cam_feat = jnp.dot(s0 * bnd0, feat, preferred_element_type=jnp.float32)  # (K, D)
    _query = cam_feat + q

    # ---- fused sampling-offset + attention-weight linear (single dot) ----
    ow = jnp.dot(_query, w_ow_ref[...], preferred_element_type=jnp.float32) + b_ow_ref[...]
    so = ow[:, :so_cols]                                # (K, 2*nh*np)
    aw = ow[:, so_cols:]                                # (K, nh*np)

    # Softmax over points per head: one row-global max (shift invariant) + one exp
    # pass; per-head denominators via tiny lane-slice adds, reciprocal folded into
    # the per-point weight.
    aw = jnp.exp(aw - jnp.max(aw, axis=1, keepdims=True))

    # ---- per-head sampling matrices with softmax(attn) and bound mask folded in ----
    s_heads = []
    for h in range(n_heads):
        denom = aw[:, h * n_points:h * n_points + 1]
        for p in range(1, n_points):
            denom = denom + aw[:, h * n_points + p:h * n_points + p + 1]
        inv_denom = 1.0 / denom                          # (K, 1)
        s_h = None
        for p in range(n_points):
            idx = h * n_points + p
            w_p = aw[:, idx:idx + 1] * inv_denom         # softmaxed attention weight
            pc0 = px + so[:, 2 * idx:2 * idx + 1] * inv_h
            pc1 = py + so[:, 2 * idx + 1:2 * idx + 2] * inv_w
            hat, bnd = sample_rows(pc0, pc1)
            term = hat * (bnd * w_p)
            s_h = term if s_h is None else s_h + term
        s_heads.append(s_h)

    # Stack heads along rows -> ONE sampling matmul with M = n_heads*K (f32 LHS per
    # the accuracy feedback; feature block already contraction-major so no transpose).
    s_all = jnp.concatenate(s_heads, axis=0)                                  # (nh*K, HW)
    val_all = jnp.dot(s_all, feat, preferred_element_type=jnp.float32)        # (nh*K, D)

    # ---- pick each head's column block (precomputed masks) -> weighted feature ----
    wf = None
    for h in range(n_heads):
        term = val_all[h * K:(h + 1) * K, :] * hmask_ref[h:h + 1, :]
        wf = term if wf is None else wf + term                                # (K, D)

    # ---- fused (output_proj @ proj-slice) weight: one dot per camera ----
    contrib = jnp.dot(wf, w_fused_ref[0], preferred_element_type=jnp.float32)  # (K, D)

    # Accumulate directly into the resident output tile (index_map ignores cam).
    @pl.when(cam == 0)
    def _():
        out_ref[0] = contrib + b_final_ref[...]

    @pl.when(cam != 0)
    def _():
        out_ref[0] = out_ref[0] + contrib


def deformable_mha_forward(params, cameras, query, points, feature_dict,
                           n_heads, n_points):
    cam_keys = list(cameras.keys())
    n_cameras = len(cam_keys)
    B, K, D = query.shape
    head_dim = D // n_heads
    spatial = {feature_dict[k].shape[-2:] for k in cam_keys}
    # TODO(synk): the fused kernel assumes all cameras share (H, W); the original
    # module allows per-camera feature-map sizes.
    assert len(spatial) == 1, "fused kernel requires identical (H, W) per camera"
    H, W = feature_dict[cam_keys[0]].shape[-2:]
    HW = H * W

    # Camera projection stays in plain JAX (external utils.Camera glue).
    pix_all = jnp.stack([cameras[k](points, (H, W, 1)) for k in cam_keys], axis=0)

    # Feature slab: bf16 (halves DMA/VMEM), stored contraction-major (HW, D) so the
    # in-kernel sampling dots are plain (M, HW) @ (HW, D) with no feature transpose.
    feat_all = jnp.stack(
        [jnp.transpose(feature_dict[k].reshape(B, D, HW), (0, 2, 1)) for k in cam_keys],
        axis=0).astype(jnp.bfloat16)                                   # (nc, B, HW, D)

    # Host-precomputed per-step constants (DMA'd once per step, no per-step VALU).
    lane = jnp.arange(HW, dtype=jnp.int32)
    coords = jnp.stack([(lane % W).astype(jnp.float32),
                        (lane // W).astype(jnp.float32)], axis=0)      # (2, HW)
    hmask = jnp.repeat(jnp.eye(n_heads, dtype=jnp.float32), head_dim, axis=1)  # (nh, D)

    n_ow = 3 * n_heads * n_points  # 2*nh*np offset cols + nh*np weight cols
    kernel = functools.partial(_fused_deform_mha_kernel, H=H, W=W,
                               n_heads=n_heads, n_points=n_points)

    return pl.pallas_call(
        kernel,
        out_shape=jax.ShapeDtypeStruct((B, K, D), jnp.float32),
        grid=(B, n_cameras),
        in_specs=[
            pl.BlockSpec((1, K, D), lambda b, c: (b, 0, 0)),           # query
            pl.BlockSpec((1, 1, K, 2), lambda b, c: (c, b, 0, 0)),     # pixel coords
            pl.BlockSpec((1, 1, HW, D), lambda b, c: (c, b, 0, 0)),    # features (bf16)
            pl.BlockSpec((2, HW), lambda b, c: (0, 0)),                # col/row coord maps
            pl.BlockSpec((n_heads, D), lambda b, c: (0, 0)),           # head column masks
            pl.BlockSpec((D, n_ow), lambda b, c: (0, 0)),              # [W_so^T | W_aw^T]
            pl.BlockSpec((1, n_ow), lambda b, c: (0, 0)),              # [b_so | b_aw]
            pl.BlockSpec((1, D, D), lambda b, c: (c, 0, 0)),           # W_fused[cam]
            pl.BlockSpec((1, D), lambda b, c: (0, 0)),                 # b_final
        ],
        out_specs=pl.BlockSpec((1, K, D), lambda b, c: (b, 0, 0)),
        compiler_params=pltpu.CompilerParams(
            dimension_semantics=("parallel", "arbitrary")),
    )(query, pix_all, feat_all, coords, hmask,
      params["w_ow_t"], params["b_ow"][None, :],
      params["w_fused_cam"], params["b_final"][None, :])


# ------------------------------ parameter init ----------------------------------
def init_params(key, embed_dim, n_heads, n_points, n_cameras):
    D = embed_dim
    k1, k2 = jax.random.split(key)
    # sampling_offsets: weight = 0, bias = directional grid init (as in __init__)
    w_so = jnp.zeros((2 * n_heads * n_points, D), jnp.float32)
    thetas = jnp.arange(n_heads, dtype=jnp.float32) * (2.0 * math.pi / n_heads)
    grid_init = jnp.stack([jnp.cos(thetas), jnp.sin(thetas)], axis=-1)
    grid_init = grid_init / jnp.max(jnp.abs(grid_init), axis=-1, keepdims=True)
    grid_init = jnp.tile(grid_init[:, None, :], (1, n_points, 1))
    grid_init = grid_init * jnp.arange(1, n_points + 1, dtype=jnp.float32)[None, :, None]
    b_so = grid_init.reshape(-1)
    # attention_weights: weight = bias = 0
    w_aw = jnp.zeros((n_heads * n_points, D), jnp.float32)
    b_aw = jnp.zeros((n_heads * n_points,), jnp.float32)
    # output_proj / proj: xavier_uniform weights, zero bias
    lim_op = math.sqrt(6.0 / (D + D))
    w_op = jax.random.uniform(k1, (D, D), jnp.float32, -lim_op, lim_op)
    b_op = jnp.zeros((D,), jnp.float32)
    lim_pr = math.sqrt(6.0 / (D + n_cameras * D))
    w_proj = jax.random.uniform(k2, (D, n_cameras * D), jnp.float32, -lim_pr, lim_pr)
    b_proj = jnp.zeros((D,), jnp.float32)

    # --- kernel-side packed weights ---
    w_proj_t_cam = w_proj.T.reshape(n_cameras, D, D)           # per-camera proj slice
    # Fold output_proj into each camera's proj slice; fold b_op into the final bias.
    w_fused_cam = jnp.einsum("ij,cjk->cik", w_op.T, w_proj_t_cam)      # (nc, D, D)
    b_final = b_proj + b_op @ jnp.sum(w_proj_t_cam, axis=0)            # (D,)

    return dict(
        # raw (PyTorch-layout) weights for the reference
        w_so=w_so, b_so=b_so, w_aw=w_aw, b_aw=b_aw, w_op=w_op, b_op=b_op,
        w_proj=w_proj, b_proj=b_proj,
        # kernel-side packed / transposed / fused copies
        w_ow_t=jnp.concatenate([w_so.T, w_aw.T], axis=1),              # (D, 3*nh*np)
        b_ow=jnp.concatenate([b_so, b_aw], axis=0),                    # (3*nh*np,)
        w_fused_cam=w_fused_cam,                                       # (nc, D, D)
        b_final=b_final,                                               # (D,)
    )


# --------------------------- pure-JAX reference check ---------------------------
def _grid_sample_bilinear(feat, grid):
    # feat: (N, C, H, W); grid: (N, *S, 2); align_corners=True, zeros padding.
    N, C, H, W = feat.shape
    gx, gy = grid[..., 0], grid[..., 1]
    ix = (gx + 1.0) * 0.5 * (W - 1)
    iy = (gy + 1.0) * 0.5 * (H - 1)
    x0 = jnp.floor(ix).astype(jnp.int32)
    y0 = jnp.floor(iy).astype(jnp.int32)
    dx = ix - x0
    dy = iy - y0
    featf = feat.reshape(N, C, H * W)

    def corner(xi, yi):
        inb = ((xi >= 0) & (xi <= W - 1) & (yi >= 0) & (yi <= H - 1)).astype(feat.dtype)
        flat = jnp.clip(yi, 0, H - 1) * W + jnp.clip(xi, 0, W - 1)
        v = jnp.take_along_axis(featf, flat.reshape(N, 1, -1), axis=2)
        return v.reshape(N, C, *flat.shape[1:]) * inb[:, None]

    v00 = corner(x0, y0)
    v10 = corner(x0 + 1, y0)
    v01 = corner(x0, y0 + 1)
    v11 = corner(x0 + 1, y0 + 1)
    return (v00 * ((1 - dx) * (1 - dy))[:, None] + v10 * (dx * (1 - dy))[:, None]
            + v01 * ((1 - dx) * dy)[:, None] + v11 * (dx * dy)[:, None])


def reference_forward(params, cameras, query, points, feature_dict, n_heads, n_points):
    B, K, D = query.shape
    hd = D // n_heads
    xs = []
    for key, cam in cameras.items():
        feat = feature_dict[key]
        H, W = feat.shape[-2:]
        pix = cam(points, (H, W, 1))
        g0 = 2.0 * pix[..., 0] / (H - 1) - 1.0
        g1 = 2.0 * pix[..., 1] / (W - 1) - 1.0
        bound = ((g0 >= 0) & (g0 <= H) & (g1 >= 0) & (g1 <= W)).astype(jnp.float32)
        grid = jnp.stack([g0, g1], -1)[:, :, None, :]
        cf = _grid_sample_bilinear(feat, grid)[..., 0] * bound[:, None, :]
        _query = jnp.transpose(cf, (0, 2, 1)) + query
        so = (_query @ params["w_so"].T + params["b_so"]).reshape(B, K, n_heads, n_points, 2)
        aw = _query @ params["w_aw"].T + params["b_aw"]
        aw = jax.nn.softmax(aw.reshape(B, K, n_heads, n_points, 1), axis=-2)
        so = so / jnp.array([H, W], jnp.float32)
        pc = pix[:, :, None, None, :] + so
        p0 = 2.0 * (pc[..., 0] / (H - 1)) - 1.0
        p1 = 2.0 * (pc[..., 1] / (W - 1)) - 1.0
        bnd = ((p0 >= 0) & (p0 <= H) & (p1 >= 0) & (p1 <= W)).astype(jnp.float32)
        grid2 = jnp.transpose(jnp.stack([p0, p1], -1), (0, 2, 1, 3, 4)).reshape(
            B * n_heads, K, n_points, 2)
        feat_ph = feat.reshape(B * n_heads, hd, H, W)
        cf2 = _grid_sample_bilinear(feat_ph, grid2).reshape(B, n_heads, hd, K, n_points)
        cf2 = jnp.transpose(cf2, (0, 3, 1, 4, 2)) * bnd[..., None]
        wf = (cf2 * aw).sum(-2).reshape(B, K, D)
        xs.append(wf @ params["w_op"].T + params["b_op"])
    x = jnp.concatenate(xs, -1)
    return x @ params["w_proj"].T + params["b_proj"]


# ------------------------------------ main ---------------------------------------
if __name__ == "__main__":
    B, K, D = 2, 8, 32
    n_heads, n_points = 4, 2
    H, W = 16, 16
    cameras = {"front": PinholeCamera(0.25, 0.25, 0.5),
               "left": PinholeCamera(0.35, 0.20, -1.5)}
    n_cameras = len(cameras)

    key = jax.random.PRNGKey(0)
    kq, kp, kf1, kf2, kw = jax.random.split(key, 5)
    query = jax.random.normal(kq, (B, K, D), jnp.float32)
    points = jax.random.normal(kp, (B, K, 3), jnp.float32)
    feature_dict = {"front": jax.random.normal(kf1, (B, D, H, W), jnp.float32),
                    "left": jax.random.normal(kf2, (B, D, H, W), jnp.float32)}
    params = init_params(kw, D, n_heads, n_points, n_cameras)

    out = deformable_mha_forward(params, cameras, query, points, feature_dict,
                                 n_heads, n_points)
    out = jax.block_until_ready(out)

    ref = reference_forward(params, cameras, query, points, feature_dict,
                            n_heads, n_points)
    err = float(jnp.max(jnp.abs(out - ref)))
    assert out.shape == (B, K, D)
    assert bool(jnp.all(jnp.isfinite(out)))
    # bf16 feature slab (f32 sampling matrices / f32 accumulation) -> ~1e-2 abs error
    assert err < 5e-2, f"max abs err vs reference: {err}"
    print("KERNEL_OK")
</pallas_src>

<mosaic_0001>
module attributes {stable_mosaic.version = 11 : i64} {
  func.func @_fused_deform_mha_kernel(%arg0: i32, %arg1: i32, %arg2: memref<1x8x32xf32, #tpu.memory_space<vmem>>, %arg3: memref<1x1x8x2xf32, #tpu.memory_space<vmem>>, %arg4: memref<1x1x256x32xbf16, #tpu.memory_space<vmem>>, %arg5: memref<2x256xf32, #tpu.memory_space<vmem>>, %arg6: memref<4x32xf32, #tpu.memory_space<vmem>>, %arg7: memref<32x24xf32, #tpu.memory_space<vmem>>, %arg8: memref<1x24xf32, #tpu.memory_space<vmem>>, %arg9: memref<1x32x32xf32, #tpu.memory_space<vmem>>, %arg10: memref<1x32xf32, #tpu.memory_space<vmem>>, %arg11: memref<1x8x32xf32, #tpu.memory_space<vmem>>) attributes {dimension_semantics = [#tpu.dimension_semantics<parallel>, #tpu.dimension_semantics<arbitrary>], iteration_bounds = array<i64: 2, 2>, scalar_prefetch = 0 : i64, scratch_operands = 0 : i64, tpu.core_type = #tpu.core_type<tc>, window_params = [{transform_indices = @transform_0, window_bounds = array<i64: 1, 8, 32>}, {transform_indices = @transform_1, window_bounds = array<i64: 1, 1, 8, 2>}, {transform_indices = @transform_2, window_bounds = array<i64: 1, 1, 256, 32>}, {pipeline_mode = #tpu.pipeline_mode<synchronous>, transform_indices = @transform_3, window_bounds = array<i64: 2, 256>}, {pipeline_mode = #tpu.pipeline_mode<synchronous>, transform_indices = @transform_4, window_bounds = array<i64: 4, 32>}, {pipeline_mode = #tpu.pipeline_mode<synchronous>, transform_indices = @transform_5, window_bounds = array<i64: 32, 24>}, {pipeline_mode = #tpu.pipeline_mode<synchronous>, transform_indices = @transform_6, window_bounds = array<i64: 1, 24>}, {transform_indices = @transform_7, window_bounds = array<i64: 1, 32, 32>}, {pipeline_mode = #tpu.pipeline_mode<synchronous>, transform_indices = @transform_8, window_bounds = array<i64: 1, 32>}, {transform_indices = @transform_9, window_bounds = array<i64: 1, 8, 32>}]} {
    %c0 = arith.constant 0 : index
    %c0_0 = arith.constant 0 : index
    %c0_1 = arith.constant 0 : index
    %0 = vector.load %arg2[%c0, %c0_0, %c0_1] : memref<1x8x32xf32, #tpu.memory_space<vmem>>, vector<1x8x32xf32>
    %1 = vector.shape_cast %0 : vector<1x8x32xf32> to vector<8x32xf32>
    %c0_2 = arith.constant 0 : index
    %c0_3 = arith.constant 0 : index
    %c0_4 = arith.constant 0 : index
    %c0_5 = arith.constant 0 : index
    %2 = vector.load %arg3[%c0_2, %c0_3, %c0_4, %c0_5] : memref<1x1x8x2xf32, #tpu.memory_space<vmem>>, vector<1x1x8x2xf32>
    %3 = vector.shape_cast %2 : vector<1x1x8x2xf32> to vector<8x2xf32>
    %c0_6 = arith.constant 0 : index
    %c0_7 = arith.constant 0 : index
    %c0_8 = arith.constant 0 : index
    %c0_9 = arith.constant 0 : index
    %4 = vector.load %arg4[%c0_6, %c0_7, %c0_8, %c0_9] : memref<1x1x256x32xbf16, #tpu.memory_space<vmem>>, vector<1x1x256x32xbf16>
    %5 = vector.shape_cast %4 : vector<1x1x256x32xbf16> to vector<256x32xbf16>
    %6 = arith.extf %5 : vector<256x32xbf16> to vector<256x32xf32>
    %7 = vector.extract_strided_slice %3 {offsets = [0, 0], sizes = [8, 1], strides = [1, 1]} : vector<8x2xf32> to vector<8x1xf32>
    %8 = vector.extract_strided_slice %3 {offsets = [0, 1], sizes = [8, 1], strides = [1, 1]} : vector<8x2xf32> to vector<8x1xf32>
    %c0_10 = arith.constant 0 : index
    %c0_11 = arith.constant 0 : index
    %9 = vector.load %arg5[%c0_10, %c0_11] : memref<2x256xf32, #tpu.memory_space<vmem>>, vector<2x256xf32>
    %10 = vector.extract_strided_slice %9 {offsets = [0, 0], sizes = [1, 256], strides = [1, 1]} : vector<2x256xf32> to vector<1x256xf32>
    %11 = vector.extract_strided_slice %9 {offsets = [1, 0], sizes = [1, 256], strides = [1, 1]} : vector<2x256xf32> to vector<1x256xf32>
    %cst = arith.constant 7.500000e+00 : f32
    %12 = vector.broadcast %cst : f32 to vector<8x1xf32>
    %13 = arith.cmpf oge, %7, %12 : vector<8x1xf32>
    %cst_12 = arith.constant 1.275000e+02 : f32
    %14 = vector.broadcast %cst_12 : f32 to vector<8x1xf32>
    %15 = arith.cmpf ole, %7, %14 : vector<8x1xf32>
    %16 = arith.andi %13, %15 : vector<8x1xi1>
    %cst_13 = arith.constant 7.500000e+00 : f32
    %17 = vector.broadcast %cst_13 : f32 to vector<8x1xf32>
    %18 = arith.cmpf oge, %8, %17 : vector<8x1xf32>
    %19 = arith.andi %16, %18 : vector<8x1xi1>
    %cst_14 = arith.constant 1.275000e+02 : f32
    %20 = vector.broadcast %cst_14 : f32 to vector<8x1xf32>
    %21 = arith.cmpf ole, %8, %20 : vector<8x1xf32>
    %22 = arith.andi %19, %21 : vector<8x1xi1>
    %23 = arith.extui %22 : vector<8x1xi1> to vector<8x1xi32>
    %24 = arith.sitofp %23 : vector<8x1xi32> to vector<8x1xf32>
    %cst_15 = arith.constant 1.000000e+00 : f32
    %25 = vector.broadcast %cst_15 : f32 to vector<8x1xf32>
    %26 = arith.mulf %7, %25 : vector<8x1xf32>
    %cst_16 = arith.constant 1.000000e+00 : f32
    %27 = vector.broadcast %cst_16 : f32 to vector<8x1xf32>
    %28 = arith.mulf %8, %27 : vector<8x1xf32>
    %29 = vector.broadcast %10 : vector<1x256xf32> to vector<8x256xf32>
    %30 = vector.broadcast %26 : vector<8x1xf32> to vector<8x256xf32>
    %31 = arith.subf %29, %30 : vector<8x256xf32>
    %32 = math.absf %31 : vector<8x256xf32>
    %cst_17 = arith.constant 1.000000e+00 : f32
    %33 = vector.broadcast %cst_17 : f32 to vector<8x256xf32>
    %34 = arith.subf %33, %32 : vector<8x256xf32>
    %cst_18 = arith.constant 0.000000e+00 : f32
    %35 = vector.broadcast %cst_18 : f32 to vector<8x256xf32>
    %36 = arith.maximumf %35, %34 : vector<8x256xf32>
    %37 = vector.broadcast %11 : vector<1x256xf32> to vector<8x256xf32>
    %38 = vector.broadcast %28 : vector<8x1xf32> to vector<8x256xf32>
    %39 = arith.subf %37, %38 : vector<8x256xf32>
    %40 = math.absf %39 : vector<8x256xf32>
    %cst_19 = arith.constant 1.000000e+00 : f32
    %41 = vector.broadcast %cst_19 : f32 to vector<8x256xf32>
    %42 = arith.subf %41, %40 : vector<8x256xf32>
    %cst_20 = arith.constant 0.000000e+00 : f32
    %43 = vector.broadcast %cst_20 : f32 to vector<8x256xf32>
    %44 = arith.maximumf %43, %42 : vector<8x256xf32>
    %45 = arith.mulf %36, %44 : vector<8x256xf32>
    %46 = vector.broadcast %24 : vector<8x1xf32> to vector<8x256xf32>
    %47 = arith.mulf %45, %46 : vector<8x256xf32>
    %cst_21 = arith.constant dense<0.000000e+00> : vector<8x32xf32>
    %48 = tpu.matmul %47, %6, %cst_21 {dimension_numbers = #tpu.dot_dimension_numbers<[1], [0], [0], [1], [0, 0, 1, 1], [], []>} : vector<8x256xf32>, vector<256x32xf32>, vector<8x32xf32> -> vector<8x32xf32>
    %49 = arith.addf %48, %1 : vector<8x32xf32>
    %c0_22 = arith.constant 0 : index
    %c0_23 = arith.constant 0 : index
    %50 = vector.load %arg7[%c0_22, %c0_23] : memref<32x24xf32, #tpu.memory_space<vmem>>, vector<32x24xf32>
    %cst_24 = arith.constant dense<0.000000e+00> : vector<8x24xf32>
    %51 = tpu.matmul %49, %50, %cst_24 {dimension_numbers = #tpu.dot_dimension_numbers<[1], [0], [0], [1], [0, 0, 1, 1], [], []>} : vector<8x32xf32>, vector<32x24xf32>, vector<8x24xf32> -> vector<8x24xf32>
    %c0_25 = arith.constant 0 : index
    %c0_26 = arith.constant 0 : index
    %52 = vector.load %arg8[%c0_25, %c0_26] : memref<1x24xf32, #tpu.memory_space<vmem>>, vector<1x24xf32>
    %53 = vector.broadcast %52 : vector<1x24xf32> to vector<8x24xf32>
    %54 = arith.addf %51, %53 : vector<8x24xf32>
    %55 = vector.extract_strided_slice %54 {offsets = [0, 0], sizes = [8, 16], strides = [1, 1]} : vector<8x24xf32> to vector<8x16xf32>
    %56 = vector.extract_strided_slice %54 {offsets = [0, 16], sizes = [8, 8], strides = [1, 1]} : vector<8x24xf32> to vector<8x8xf32>
    %cst_27 = arith.constant dense<0xFF800000> : vector<8xf32>
    %57 = vector.multi_reduction <maximumf>, %56, %cst_27 [1] : vector<8x8xf32> to vector<8xf32>
    %58 = vector.shape_cast %57 : vector<8xf32> to vector<8x1xf32>
    %59 = vector.broadcast %58 : vector<8x1xf32> to vector<8x8xf32>
    %60 = arith.subf %56, %59 : vector<8x8xf32>
    %61 = math.exp %60 : vector<8x8xf32>
    %62 = vector.extract_strided_slice %61 {offsets = [0, 0], sizes = [8, 1], strides = [1, 1]} : vector<8x8xf32> to vector<8x1xf32>
    %63 = vector.extract_strided_slice %61 {offsets = [0, 1], sizes = [8, 1], strides = [1, 1]} : vector<8x8xf32> to vector<8x1xf32>
    %64 = arith.addf %62, %63 : vector<8x1xf32>
    %cst_28 = arith.constant 1.000000e+00 : f32
    %65 = vector.broadcast %cst_28 : f32 to vector<8x1xf32>
    %66 = arith.divf %65, %64 : vector<8x1xf32>
    %67 = vector.extract_strided_slice %61 {offsets = [0, 0], sizes = [8, 1], strides = [1, 1]} : vector<8x8xf32> to vector<8x1xf32>
    %68 = arith.mulf %67, %66 : vector<8x1xf32>
    %69 = vector.extract_strided_slice %55 {offsets = [0, 0], sizes = [8, 1], strides = [1, 1]} : vector<8x16xf32> to vector<8x1xf32>
    %cst_29 = arith.constant 6.250000e-02 : f32
    %70 = vector.broadcast %cst_29 : f32 to vector<8x1xf32>
    %71 = arith.mulf %69, %70 : vector<8x1xf32>
    %72 = arith.addf %7, %71 : vector<8x1xf32>
    %73 = vector.extract_strided_slice %55 {offsets = [0, 1], sizes = [8, 1], strides = [1, 1]} : vector<8x16xf32> to vector<8x1xf32>
    %cst_30 = arith.constant 6.250000e-02 : f32
    %74 = vector.broadcast %cst_30 : f32 to vector<8x1xf32>
    %75 = arith.mulf %73, %74 : vector<8x1xf32>
    %76 = arith.addf %8, %75 : vector<8x1xf32>
    %cst_31 = arith.constant 7.500000e+00 : f32
    %77 = vector.broadcast %cst_31 : f32 to vector<8x1xf32>
    %78 = arith.cmpf oge, %72, %77 : vector<8x1xf32>
    %cst_32 = arith.constant 1.275000e+02 : f32
    %79 = vector.broadcast %cst_32 : f32 to vector<8x1xf32>
    %80 = arith.cmpf ole, %72, %79 : vector<8x1xf32>
    %81 = arith.andi %78, %80 : vector<8x1xi1>
    %cst_33 = arith.constant 7.500000e+00 : f32
    %82 = vector.broadcast %cst_33 : f32 to vector<8x1xf32>
    %83 = arith.cmpf oge, %76, %82 : vector<8x1xf32>
    %84 = arith.andi %81, %83 : vector<8x1xi1>
    %cst_34 = arith.constant 1.275000e+02 : f32
    %85 = vector.broadcast %cst_34 : f32 to vector<8x1xf32>
    %86 = arith.cmpf ole, %76, %85 : vector<8x1xf32>
    %87 = arith.andi %84, %86 : vector<8x1xi1>
    %88 = arith.extui %87 : vector<8x1xi1> to vector<8x1xi32>
    %89 = arith.sitofp %88 : vector<8x1xi32> to vector<8x1xf32>
    %cst_35 = arith.constant 1.000000e+00 : f32
    %90 = vector.broadcast %cst_35 : f32 to vector<8x1xf32>
    %91 = arith.mulf %72, %90 : vector<8x1xf32>
    %cst_36 = arith.constant 1.000000e+00 : f32
    %92 = vector.broadcast %cst_36 : f32 to vector<8x1xf32>
    %93 = arith.mulf %76, %92 : vector<8x1xf32>
    %94 = vector.broadcast %10 : vector<1x256xf32> to vector<8x256xf32>
    %95 = vector.broadcast %91 : vector<8x1xf32> to vector<8x256xf32>
    %96 = arith.subf %94, %95 : vector<8x256xf32>
    %97 = math.absf %96 : vector<8x256xf32>
    %cst_37 = arith.constant 1.000000e+00 : f32
    %98 = vector.broadcast %cst_37 : f32 to vector<8x256xf32>
    %99 = arith.subf %98, %97 : vector<8x256xf32>
    %cst_38 = arith.constant 0.000000e+00 : f32
    %100 = vector.broadcast %cst_38 : f32 to vector<8x256xf32>
    %101 = arith.maximumf %100, %99 : vector<8x256xf32>
    %102 = vector.broadcast %11 : vector<1x256xf32> to vector<8x256xf32>
    %103 = vector.broadcast %93 : vector<8x1xf32> to vector<8x256xf32>
    %104 = arith.subf %102, %103 : vector<8x256xf32>
    %105 = math.absf %104 : vector<8x256xf32>
    %cst_39 = arith.constant 1.000000e+00 : f32
    %106 = vector.broadcast %cst_39 : f32 to vector<8x256xf32>
    %107 = arith.subf %106, %105 : vector<8x256xf32>
    %cst_40 = arith.constant 0.000000e+00 : f32
    %108 = vector.broadcast %cst_40 : f32 to vector<8x256xf32>
    %109 = arith.maximumf %108, %107 : vector<8x256xf32>
    %110 = arith.mulf %101, %109 : vector<8x256xf32>
    %111 = arith.mulf %89, %68 : vector<8x1xf32>
    %112 = vector.broadcast %111 : vector<8x1xf32> to vector<8x256xf32>
    %113 = arith.mulf %110, %112 : vector<8x256xf32>
    %114 = vector.extract_strided_slice %61 {offsets = [0, 1], sizes = [8, 1], strides = [1, 1]} : vector<8x8xf32> to vector<8x1xf32>
    %115 = arith.mulf %114, %66 : vector<8x1xf32>
    %116 = vector.extract_strided_slice %55 {offsets = [0, 2], sizes = [8, 1], strides = [1, 1]} : vector<8x16xf32> to vector<8x1xf32>
    %cst_41 = arith.constant 6.250000e-02 : f32
    %117 = vector.broadcast %cst_41 : f32 to vector<8x1xf32>
    %118 = arith.mulf %116, %117 : vector<8x1xf32>
    %119 = arith.addf %7, %118 : vector<8x1xf32>
    %120 = vector.extract_strided_slice %55 {offsets = [0, 3], sizes = [8, 1], strides = [1, 1]} : vector<8x16xf32> to vector<8x1xf32>
    %cst_42 = arith.constant 6.250000e-02 : f32
    %121 = vector.broadcast %cst_42 : f32 to vector<8x1xf32>
    %122 = arith.mulf %120, %121 : vector<8x1xf32>
    %123 = arith.addf %8, %122 : vector<8x1xf32>
    %cst_43 = arith.constant 7.500000e+00 : f32
    %124 = vector.broadcast %cst_43 : f32 to vector<8x1xf32>
    %125 = arith.cmpf oge, %119, %124 : vector<8x1xf32>
    %cst_44 = arith.constant 1.275000e+02 : f32
    %126 = vector.broadcast %cst_44 : f32 to vector<8x1xf32>
    %127 = arith.cmpf ole, %119, %126 : vector<8x1xf32>
    %128 = arith.andi %125, %127 : vector<8x1xi1>
    %cst_45 = arith.constant 7.500000e+00 : f32
    %129 = vector.broadcast %cst_45 : f32 to vector<8x1xf32>
    %130 = arith.cmpf oge, %123, %129 : vector<8x1xf32>
    %131 = arith.andi %128, %130 : vector<8x1xi1>
    %cst_46 = arith.constant 1.275000e+02 : f32
    %132 = vector.broadcast %cst_46 : f32 to vector<8x1xf32>
    %133 = arith.cmpf ole, %123, %132 : vector<8x1xf32>
    %134 = arith.andi %131, %133 : vector<8x1xi1>
    %135 = arith.extui %134 : vector<8x1xi1> to vector<8x1xi32>
    %136 = arith.sitofp %135 : vector<8x1xi32> to vector<8x1xf32>
    %cst_47 = arith.constant 1.000000e+00 : f32
    %137 = vector.broadcast %cst_47 : f32 to vector<8x1xf32>
    %138 = arith.mulf %119, %137 : vector<8x1xf32>
    %cst_48 = arith.constant 1.000000e+00 : f32
    %139 = vector.broadcast %cst_48 : f32 to vector<8x1xf32>
    %140 = arith.mulf %123, %139 : vector<8x1xf32>
    %141 = vector.broadcast %10 : vector<1x256xf32> to vector<8x256xf32>
    %142 = vector.broadcast %138 : vector<8x1xf32> to vector<8x256xf32>
    %143 = arith.subf %141, %142 : vector<8x256xf32>
    %144 = math.absf %143 : vector<8x256xf32>
    %cst_49 = arith.constant 1.000000e+00 : f32
    %145 = vector.broadcast %cst_49 : f32 to vector<8x256xf32>
    %146 = arith.subf %145, %144 : vector<8x256xf32>
    %cst_50 = arith.constant 0.000000e+00 : f32
    %147 = vector.broadcast %cst_50 : f32 to vector<8x256xf32>
    %148 = arith.maximumf %147, %146 : vector<8x256xf32>
    %149 = vector.broadcast %11 : vector<1x256xf32> to vector<8x256xf32>
    %150 = vector.broadcast %140 : vector<8x1xf32> to vector<8x256xf32>
    %151 = arith.subf %149, %150 : vector<8x256xf32>
    %152 = math.absf %151 : vector<8x256xf32>
    %cst_51 = arith.constant 1.000000e+00 : f32
    %153 = vector.broadcast %cst_51 : f32 to vector<8x256xf32>
    %154 = arith.subf %153, %152 : vector<8x256xf32>
    %cst_52 = arith.constant 0.000000e+00 : f32
    %155 = vector.broadcast %cst_52 : f32 to vector<8x256xf32>
    %156 = arith.maximumf %155, %154 : vector<8x256xf32>
    %157 = arith.mulf %148, %156 : vector<8x256xf32>
    %158 = arith.mulf %136, %115 : vector<8x1xf32>
    %159 = vector.broadcast %158 : vector<8x1xf32> to vector<8x256xf32>
    %160 = arith.mulf %157, %159 : vector<8x256xf32>
    %161 = arith.addf %113, %160 : vector<8x256xf32>
    %162 = vector.extract_strided_slice %61 {offsets = [0, 2], sizes = [8, 1], strides = [1, 1]} : vector<8x8xf32> to vector<8x1xf32>
    %163 = vector.extract_strided_slice %61 {offsets = [0, 3], sizes = [8, 1], strides = [1, 1]} : vector<8x8xf32> to vector<8x1xf32>
    %164 = arith.addf %162, %163 : vector<8x1xf32>
    %cst_53 = arith.constant 1.000000e+00 : f32
    %165 = vector.broadcast %cst_53 : f32 to vector<8x1xf32>
    %166 = arith.divf %165, %164 : vector<8x1xf32>
    %167 = vector.extract_strided_slice %61 {offsets = [0, 2], sizes = [8, 1], strides = [1, 1]} : vector<8x8xf32> to vector<8x1xf32>
    %168 = arith.mulf %167, %166 : vector<8x1xf32>
    %169 = vector.extract_strided_slice %55 {offsets = [0, 4], sizes = [8, 1], strides = [1, 1]} : vector<8x16xf32> to vector<8x1xf32>
    %cst_54 = arith.constant 6.250000e-02 : f32
    %170 = vector.broadcast %cst_54 : f32 to vector<8x1xf32>
    %171 = arith.mulf %169, %170 : vector<8x1xf32>
    %172 = arith.addf %7, %171 : vector<8x1xf32>
    %173 = vector.extract_strided_slice %55 {offsets = [0, 5], sizes = [8, 1], strides = [1, 1]} : vector<8x16xf32> to vector<8x1xf32>
    %cst_55 = arith.constant 6.250000e-02 : f32
    %174 = vector.broadcast %cst_55 : f32 to vector<8x1xf32>
    %175 = arith.mulf %173, %174 : vector<8x1xf32>
    %176 = arith.addf %8, %175 : vector<8x1xf32>
    %cst_56 = arith.constant 7.500000e+00 : f32
    %177 = vector.broadcast %cst_56 : f32 to vector<8x1xf32>
    %178 = arith.cmpf oge, %172, %177 : vector<8x1xf32>
    %cst_57 = arith.constant 1.275000e+02 : f32
    %179 = vector.broadcast %cst_57 : f32 to vector<8x1xf32>
    %180 = arith.cmpf ole, %172, %179 : vector<8x1xf32>
    %181 = arith.andi %178, %180 : vector<8x1xi1>
    %cst_58 = arith.constant 7.500000e+00 : f32
    %182 = vector.broadcast %cst_58 : f32 to vector<8x1xf32>
    %183 = arith.cmpf oge, %176, %182 : vector<8x1xf32>
    %184 = arith.andi %181, %183 : vector<8x1xi1>
    %cst_59 = arith.constant 1.275000e+02 : f32
    %185 = vector.broadcast %cst_59 : f32 to vector<8x1xf32>
    %186 = arith.cmpf ole, %176, %185 : vector<8x1xf32>
    %187 = arith.andi %184, %186 : vector<8x1xi1>
    %188 = arith.extui %187 : vector<8x1xi1> to vector<8x1xi32>
    %189 = arith.sitofp %188 : vector<8x1xi32> to vector<8x1xf32>
    %cst_60 = arith.constant 1.000000e+00 : f32
    %190 = vector.broadcast %cst_60 : f32 to vector<8x1xf32>
    %191 = arith.mulf %172, %190 : vector<8x1xf32>
    %cst_61 = arith.constant 1.000000e+00 : f32
    %192 = vector.broadcast %cst_61 : f32 to vector<8x1xf32>
    %193 = arith.mulf %176, %192 : vector<8x1xf32>
    %194 = vector.broadcast %10 : vector<1x256xf32> to vector<8x256xf32>
    %195 = vector.broadcast %191 : vector<8x1xf32> to vector<8x256xf32>
    %196 = arith.subf %194, %195 : vector<8x256xf32>
    %197 = math.absf %196 : vector<8x256xf32>
    %cst_62 = arith.constant 1.000000e+00 : f32
    %198 = vector.broadcast %cst_62 : f32 to vector<8x256xf32>
    %199 = arith.subf %198, %197 : vector<8x256xf32>
    %cst_63 = arith.constant 0.000000e+00 : f32
    %200 = vector.broadcast %cst_63 : f32 to vector<8x256xf32>
    %201 = arith.maximumf %200, %199 : vector<8x256xf32>
    %202 = vector.broadcast %11 : vector<1x256xf32> to vector<8x256xf32>
    %203 = vector.broadcast %193 : vector<8x1xf32> to vector<8x256xf32>
    %204 = arith.subf %202, %203 : vector<8x256xf32>
    %205 = math.absf %204 : vector<8x256xf32>
    %cst_64 = arith.constant 1.000000e+00 : f32
    %206 = vector.broadcast %cst_64 : f32 to vector<8x256xf32>
    %207 = arith.subf %206, %205 : vector<8x256xf32>
    %cst_65 = arith.constant 0.000000e+00 : f32
    %208 = vector.broadcast %cst_65 : f32 to vector<8x256xf32>
    %209 = arith.maximumf %208, %207 : vector<8x256xf32>
    %210 = arith.mulf %201, %209 : vector<8x256xf32>
    %211 = arith.mulf %189, %168 : vector<8x1xf32>
    %212 = vector.broadcast %211 : vector<8x1xf32> to vector<8x256xf32>
    %213 = arith.mulf %210, %212 : vector<8x256xf32>
    %214 = vector.extract_strided_slice %61 {offsets = [0, 3], sizes = [8, 1], strides = [1, 1]} : vector<8x8xf32> to vector<8x1xf32>
    %215 = arith.mulf %214, %166 : vector<8x1xf32>
    %216 = vector.extract_strided_slice %55 {offsets = [0, 6], sizes = [8, 1], strides = [1, 1]} : vector<8x16xf32> to vector<8x1xf32>
    %cst_66 = arith.constant 6.250000e-02 : f32
    %217 = vector.broadcast %cst_66 : f32 to vector<8x1xf32>
    %218 = arith.mulf %216, %217 : vector<8x1xf32>
    %219 = arith.addf %7, %218 : vector<8x1xf32>
    %220 = vector.extract_strided_slice %55 {offsets = [0, 7], sizes = [8, 1], strides = [1, 1]} : vector<8x16xf32> to vector<8x1xf32>
    %cst_67 = arith.constant 6.250000e-02 : f32
    %221 = vector.broadcast %cst_67 : f32 to vector<8x1xf32>
    %222 = arith.mulf %220, %221 : vector<8x1xf32>
    %223 = arith.addf %8, %222 : vector<8x1xf32>
    %cst_68 = arith.constant 7.500000e+00 : f32
    %224 = vector.broadcast %cst_68 : f32 to vector<8x1xf32>
    %225 = arith.cmpf oge, %219, %224 : vector<8x1xf32>
    %cst_69 = arith.constant 1.275000e+02 : f32
    %226 = vector.broadcast %cst_69 : f32 to vector<8x1xf32>
    %227 = arith.cmpf ole, %219, %226 : vector<8x1xf32>
    %228 = arith.andi %225, %227 : vector<8x1xi1>
    %cst_70 = arith.constant 7.500000e+00 : f32
    %229 = vector.broadcast %cst_70 : f32 to vector<8x1xf32>
    %230 = arith.cmpf oge, %223, %229 : vector<8x1xf32>
    %231 = arith.andi %228, %230 : vector<8x1xi1>
    %cst_71 = arith.constant 1.275000e+02 : f32
    %232 = vector.broadcast %cst_71 : f32 to vector<8x1xf32>
    %233 = arith.cmpf ole, %223, %232 : vector<8x1xf32>
    %234 = arith.andi %231, %233 : vector<8x1xi1>
    %235 = arith.extui %234 : vector<8x1xi1> to vector<8x1xi32>
    %236 = arith.sitofp %235 : vector<8x1xi32> to vector<8x1xf32>
    %cst_72 = arith.constant 1.000000e+00 : f32
    %237 = vector.broadcast %cst_72 : f32 to vector<8x1xf32>
    %238 = arith.mulf %219, %237 : vector<8x1xf32>
    %cst_73 = arith.constant 1.000000e+00 : f32
    %239 = vector.broadcast %cst_73 : f32 to vector<8x1xf32>
    %240 = arith.mulf %223, %239 : vector<8x1xf32>
    %241 = vector.broadcast %10 : vector<1x256xf32> to vector<8x256xf32>
    %242 = vector.broadcast %238 : vector<8x1xf32> to vector<8x256xf32>
    %243 = arith.subf %241, %242 : vector<8x256xf32>
    %244 = math.absf %243 : vector<8x256xf32>
    %cst_74 = arith.constant 1.000000e+00 : f32
    %245 = vector.broadcast %cst_74 : f32 to vector<8x256xf32>
    %246 = arith.subf %245, %244 : vector<8x256xf32>
    %cst_75 = arith.constant 0.000000e+00 : f32
    %247 = vector.broadcast %cst_75 : f32 to vector<8x256xf32>
    %248 = arith.maximumf %247, %246 : vector<8x256xf32>
    %249 = vector.broadcast %11 : vector<1x256xf32> to vector<8x256xf32>
    %250 = vector.broadcast %240 : vector<8x1xf32> to vector<8x256xf32>
    %251 = arith.subf %249, %250 : vector<8x256xf32>
    %252 = math.absf %251 : vector<8x256xf32>
    %cst_76 = arith.constant 1.000000e+00 : f32
    %253 = vector.broadcast %cst_76 : f32 to vector<8x256xf32>
    %254 = arith.subf %253, %252 : vector<8x256xf32>
    %cst_77 = arith.constant 0.000000e+00 : f32
    %255 = vector.broadcast %cst_77 : f32 to vector<8x256xf32>
    %256 = arith.maximumf %255, %254 : vector<8x256xf32>
    %257 = arith.mulf %248, %256 : vector<8x256xf32>
    %258 = arith.mulf %236, %215 : vector<8x1xf32>
    %259 = vector.broadcast %258 : vector<8x1xf32> to vector<8x256xf32>
    %260 = arith.mulf %257, %259 : vector<8x256xf32>
    %261 = arith.addf %213, %260 : vector<8x256xf32>
    %262 = vector.extract_strided_slice %61 {offsets = [0, 4], sizes = [8, 1], strides = [1, 1]} : vector<8x8xf32> to vector<8x1xf32>
    %263 = vector.extract_strided_slice %61 {offsets = [0, 5], sizes = [8, 1], strides = [1, 1]} : vector<8x8xf32> to vector<8x1xf32>
    %264 = arith.addf %262, %263 : vector<8x1xf32>
    %cst_78 = arith.constant 1.000000e+00 : f32
    %265 = vector.broadcast %cst_78 : f32 to vector<8x1xf32>
    %266 = arith.divf %265, %264 : vector<8x1xf32>
    %267 = vector.extract_strided_slice %61 {offsets = [0, 4], sizes = [8, 1], strides = [1, 1]} : vector<8x8xf32> to vector<8x1xf32>
    %268 = arith.mulf %267, %266 : vector<8x1xf32>
    %269 = vector.extract_strided_slice %55 {offsets = [0, 8], sizes = [8, 1], strides = [1, 1]} : vector<8x16xf32> to vector<8x1xf32>
    %cst_79 = arith.constant 6.250000e-02 : f32
    %270 = vector.broadcast %cst_79 : f32 to vector<8x1xf32>
    %271 = arith.mulf %269, %270 : vector<8x1xf32>
    %272 = arith.addf %7, %271 : vector<8x1xf32>
    %273 = vector.extract_strided_slice %55 {offsets = [0, 9], sizes = [8, 1], strides = [1, 1]} : vector<8x16xf32> to vector<8x1xf32>
    %cst_80 = arith.constant 6.250000e-02 : f32
    %274 = vector.broadcast %cst_80 : f32 to vector<8x1xf32>
    %275 = arith.mulf %273, %274 : vector<8x1xf32>
    %276 = arith.addf %8, %275 : vector<8x1xf32>
    %cst_81 = arith.constant 7.500000e+00 : f32
    %277 = vector.broadcast %cst_81 : f32 to vector<8x1xf32>
    %278 = arith.cmpf oge, %272, %277 : vector<8x1xf32>
    %cst_82 = arith.constant 1.275000e+02 : f32
    %279 = vector.broadcast %cst_82 : f32 to vector<8x1xf32>
    %280 = arith.cmpf ole, %272, %279 : vector<8x1xf32>
    %281 = arith.andi %278, %280 : vector<8x1xi1>
    %cst_83 = arith.constant 7.500000e+00 : f32
    %282 = vector.broadcast %cst_83 : f32 to vector<8x1xf32>
    %283 = arith.cmpf oge, %276, %282 : vector<8x1xf32>
    %284 = arith.andi %281, %283 : vector<8x1xi1>
    %cst_84 = arith.constant 1.275000e+02 : f32
    %285 = vector.broadcast %cst_84 : f32 to vector<8x1xf32>
    %286 = arith.cmpf ole, %276, %285 : vector<8x1xf32>
    %287 = arith.andi %284, %286 : vector<8x1xi1>
    %288 = arith.extui %287 : vector<8x1xi1> to vector<8x1xi32>
    %289 = arith.sitofp %288 : vector<8x1xi32> to vector<8x1xf32>
    %cst_85 = arith.constant 1.000000e+00 : f32
    %290 = vector.broadcast %cst_85 : f32 to vector<8x1xf32>
    %291 = arith.mulf %272, %290 : vector<8x1xf32>
    %cst_86 = arith.constant 1.000000e+00 : f32
    %292 = vector.broadcast %cst_86 : f32 to vector<8x1xf32>
    %293 = arith.mulf %276, %292 : vector<8x1xf32>
    %294 = vector.broadcast %10 : vector<1x256xf32> to vector<8x256xf32>
    %295 = vector.broadcast %291 : vector<8x1xf32> to vector<8x256xf32>
    %296 = arith.subf %294, %295 : vector<8x256xf32>
    %297 = math.absf %296 : vector<8x256xf32>
    %cst_87 = arith.constant 1.000000e+00 : f32
    %298 = vector.broadcast %cst_87 : f32 to vector<8x256xf32>
    %299 = arith.subf %298, %297 : vector<8x256xf32>
    %cst_88 = arith.constant 0.000000e+00 : f32
    %300 = vector.broadcast %cst_88 : f32 to vector<8x256xf32>
    %301 = arith.maximumf %300, %299 : vector<8x256xf32>
    %302 = vector.broadcast %11 : vector<1x256xf32> to vector<8x256xf32>
    %303 = vector.broadcast %293 : vector<8x1xf32> to vector<8x256xf32>
    %304 = arith.subf %302, %303 : vector<8x256xf32>
    %305 = math.absf %304 : vector<8x256xf32>
    %cst_89 = arith.constant 1.000000e+00 : f32
    %306 = vector.broadcast %cst_89 : f32 to vector<8x256xf32>
    %307 = arith.subf %306, %305 : vector<8x256xf32>
    %cst_90 = arith.constant 0.000000e+00 : f32
    %308 = vector.broadcast %cst_90 : f32 to vector<8x256xf32>
    %309 = arith.maximumf %308, %307 : vector<8x256xf32>
    %310 = arith.mulf %301, %309 : vector<8x256xf32>
    %311 = arith.mulf %289, %268 : vector<8x1xf32>
    %312 = vector.broadcast %311 : vector<8x1xf32> to vector<8x256xf32>
    %313 = arith.mulf %310, %312 : vector<8x256xf32>
    %314 = vector.extract_strided_slice %61 {offsets = [0, 5], sizes = [8, 1], strides = [1, 1]} : vector<8x8xf32> to vector<8x1xf32>
    %315 = arith.mulf %314, %266 : vector<8x1xf32>
    %316 = vector.extract_strided_slice %55 {offsets = [0, 10], sizes = [8, 1], strides = [1, 1]} : vector<8x16xf32> to vector<8x1xf32>
    %cst_91 = arith.constant 6.250000e-02 : f32
    %317 = vector.broadcast %cst_91 : f32 to vector<8x1xf32>
    %318 = arith.mulf %316, %317 : vector<8x1xf32>
    %319 = arith.addf %7, %318 : vector<8x1xf32>
    %320 = vector.extract_strided_slice %55 {offsets = [0, 11], sizes = [8, 1], strides = [1, 1]} : vector<8x16xf32> to vector<8x1xf32>
    %cst_92 = arith.constant 6.250000e-02 : f32
    %321 = vector.broadcast %cst_92 : f32 to vector<8x1xf32>
    %322 = arith.mulf %320, %321 : vector<8x1xf32>
    %323 = arith.addf %8, %322 : vector<8x1xf32>
    %cst_93 = arith.constant 7.500000e+00 : f32
    %324 = vector.broadcast %cst_93 : f32 to vector<8x1xf32>
    %325 = arith.cmpf oge, %319, %324 : vector<8x1xf32>
    %cst_94 = arith.constant 1.275000e+02 : f32
    %326 = vector.broadcast %cst_94 : f32 to vector<8x1xf32>
    %327 = arith.cmpf ole, %319, %326 : vector<8x1xf32>
    %328 = arith.andi %325, %327 : vector<8x1xi1>
    %cst_95 = arith.constant 7.500000e+00 : f32
    %329 = vector.broadcast %cst_95 : f32 to vector<8x1xf32>
    %330 = arith.cmpf oge, %323, %329 : vector<8x1xf32>
    %331 = arith.andi %328, %330 : vector<8x1xi1>
    %cst_96 = arith.constant 1.275000e+02 : f32
    %332 = vector.broadcast %cst_96 : f32 to vector<8x1xf32>
    %333 = arith.cmpf ole, %323, %332 : vector<8x1xf32>
    %334 = arith.andi %331, %333 : vector<8x1xi1>
    %335 = arith.extui %334 : vector<8x1xi1> to vector<8x1xi32>
    %336 = arith.sitofp %335 : vector<8x1xi32> to vector<8x1xf32>
    %cst_97 = arith.constant 1.000000e+00 : f32
    %337 = vector.broadcast %cst_97 : f32 to vector<8x1xf32>
    %338 = arith.mulf %319, %337 : vector<8x1xf32>
    %cst_98 = arith.constant 1.000000e+00 : f32
    %339 = vector.broadcast %cst_98 : f32 to vector<8x1xf32>
    %340 = arith.mulf %323, %339 : vector<8x1xf32>
    %341 = vector.broadcast %10 : vector<1x256xf32> to vector<8x256xf32>
    %342 = vector.broadcast %338 : vector<8x1xf32> to vector<8x256xf32>
    %343 = arith.subf %341, %342 : vector<8x256xf32>
    %344 = math.absf %343 : vector<8x256xf32>
    %cst_99 = arith.constant 1.000000e+00 : f32
    %345 = vector.broadcast %cst_99 : f32 to vector<8x256xf32>
    %346 = arith.subf %345, %344 : vector<8x256xf32>
    %cst_100 = arith.constant 0.000000e+00 : f32
    %347 = vector.broadcast %cst_100 : f32 to vector<8x256xf32>
    %348 = arith.maximumf %347, %346 : vector<8x256xf32>
    %349 = vector.broadcast %11 : vector<1x256xf32> to vector<8x256xf32>
    %350 = vector.broadcast %340 : vector<8x1xf32> to vector<8x256xf32>
    %351 = arith.subf %349, %350 : vector<8x256xf32>
    %352 = math.absf %351 : vector<8x256xf32>
    %cst_101 = arith.constant 1.000000e+00 : f32
    %353 = vector.broadcast %cst_101 : f32 to vector<8x256xf32>
    %354 = arith.subf %353, %352 : vector<8x256xf32>
    %cst_102 = arith.constant 0.000000e+00 : f32
    %355 = vector.broadcast %cst_102 : f32 to vector<8x256xf32>
    %356 = arith.maximumf %355, %354 : vector<8x256xf32>
    %357 = arith.mulf %348, %356 : vector<8x256xf32>
    %358 = arith.mulf %336, %315 : vector<8x1xf32>
    %359 = vector.broadcast %358 : vector<8x1xf32> to vector<8x256xf32>
    %360 = arith.mulf %357, %359 : vector<8x256xf32>
    %361 = arith.addf %313, %360 : vector<8x256xf32>
    %362 = vector.extract_strided_slice %61 {offsets = [0, 6], sizes = [8, 1], strides = [1, 1]} : vector<8x8xf32> to vector<8x1xf32>
    %363 = vector.extract_strided_slice %61 {offsets = [0, 7], sizes = [8, 1], strides = [1, 1]} : vector<8x8xf32> to vector<8x1xf32>
    %364 = arith.addf %362, %363 : vector<8x1xf32>
    %cst_103 = arith.constant 1.000000e+00 : f32
    %365 = vector.broadcast %cst_103 : f32 to vector<8x1xf32>
    %366 = arith.divf %365, %364 : vector<8x1xf32>
    %367 = vector.extract_strided_slice %61 {offsets = [0, 6], sizes = [8, 1], strides = [1, 1]} : vector<8x8xf32> to vector<8x1xf32>
    %368 = arith.mulf %367, %366 : vector<8x1xf32>
    %369 = vector.extract_strided_slice %55 {offsets = [0, 12], sizes = [8, 1], strides = [1, 1]} : vector<8x16xf32> to vector<8x1xf32>
    %cst_104 = arith.constant 6.250000e-02 : f32
    %370 = vector.broadcast %cst_104 : f32 to vector<8x1xf32>
    %371 = arith.mulf %369, %370 : vector<8x1xf32>
    %372 = arith.addf %7, %371 : vector<8x1xf32>
    %373 = vector.extract_strided_slice %55 {offsets = [0, 13], sizes = [8, 1], strides = [1, 1]} : vector<8x16xf32> to vector<8x1xf32>
    %cst_105 = arith.constant 6.250000e-02 : f32
    %374 = vector.broadcast %cst_105 : f32 to vector<8x1xf32>
    %375 = arith.mulf %373, %374 : vector<8x1xf32>
    %376 = arith.addf %8, %375 : vector<8x1xf32>
    %cst_106 = arith.constant 7.500000e+00 : f32
    %377 = vector.broadcast %cst_106 : f32 to vector<8x1xf32>
    %378 = arith.cmpf oge, %372, %377 : vector<8x1xf32>
    %cst_107 = arith.constant 1.275000e+02 : f32
    %379 = vector.broadcast %cst_107 : f32 to vector<8x1xf32>
    %380 = arith.cmpf ole, %372, %379 : vector<8x1xf32>
    %381 = arith.andi %378, %380 : vector<8x1xi1>
    %cst_108 = arith.constant 7.500000e+00 : f32
    %382 = vector.broadcast %cst_108 : f32 to vector<8x1xf32>
    %383 = arith.cmpf oge, %376, %382 : vector<8x1xf32>
    %384 = arith.andi %381, %383 : vector<8x1xi1>
    %cst_109 = arith.constant 1.275000e+02 : f32
    %385 = vector.broadcast %cst_109 : f32 to vector<8x1xf32>
    %386 = arith.cmpf ole, %376, %385 : vector<8x1xf32>
    %387 = arith.andi %384, %386 : vector<8x1xi1>
    %388 = arith.extui %387 : vector<8x1xi1> to vector<8x1xi32>
    %389 = arith.sitofp %388 : vector<8x1xi32> to vector<8x1xf32>
    %cst_110 = arith.constant 1.000000e+00 : f32
    %390 = vector.broadcast %cst_110 : f32 to vector<8x1xf32>
    %391 = arith.mulf %372, %390 : vector<8x1xf32>
    %cst_111 = arith.constant 1.000000e+00 : f32
    %392 = vector.broadcast %cst_111 : f32 to vector<8x1xf32>
    %393 = arith.mulf %376, %392 : vector<8x1xf32>
    %394 = vector.broadcast %10 : vector<1x256xf32> to vector<8x256xf32>
    %395 = vector.broadcast %391 : vector<8x1xf32> to vector<8x256xf32>
    %396 = arith.subf %394, %395 : vector<8x256xf32>
    %397 = math.absf %396 : vector<8x256xf32>
    %cst_112 = arith.constant 1.000000e+00 : f32
    %398 = vector.broadcast %cst_112 : f32 to vector<8x256xf32>
    %399 = arith.subf %398, %397 : vector<8x256xf32>
    %cst_113 = arith.constant 0.000000e+00 : f32
    %400 = vector.broadcast %cst_113 : f32 to vector<8x256xf32>
    %401 = arith.maximumf %400, %399 : vector<8x256xf32>
    %402 = vector.broadcast %11 : vector<1x256xf32> to vector<8x256xf32>
    %403 = vector.broadcast %393 : vector<8x1xf32> to vector<8x256xf32>
    %404 = arith.subf %402, %403 : vector<8x256xf32>
    %405 = math.absf %404 : vector<8x256xf32>
    %cst_114 = arith.constant 1.000000e+00 : f32
    %406 = vector.broadcast %cst_114 : f32 to vector<8x256xf32>
    %407 = arith.subf %406, %405 : vector<8x256xf32>
    %cst_115 = arith.constant 0.000000e+00 : f32
    %408 = vector.broadcast %cst_115 : f32 to vector<8x256xf32>
    %409 = arith.maximumf %408, %407 : vector<8x256xf32>
    %410 = arith.mulf %401, %409 : vector<8x256xf32>
    %411 = arith.mulf %389, %368 : vector<8x1xf32>
    %412 = vector.broadcast %411 : vector<8x1xf32> to vector<8x256xf32>
    %413 = arith.mulf %410, %412 : vector<8x256xf32>
    %414 = vector.extract_strided_slice %61 {offsets = [0, 7], sizes = [8, 1], strides = [1, 1]} : vector<8x8xf32> to vector<8x1xf32>
    %415 = arith.mulf %414, %366 : vector<8x1xf32>
    %416 = vector.extract_strided_slice %55 {offsets = [0, 14], sizes = [8, 1], strides = [1, 1]} : vector<8x16xf32> to vector<8x1xf32>
    %cst_116 = arith.constant 6.250000e-02 : f32
    %417 = vector.broadcast %cst_116 : f32 to vector<8x1xf32>
    %418 = arith.mulf %416, %417 : vector<8x1xf32>
    %419 = arith.addf %7, %418 : vector<8x1xf32>
    %420 = vector.extract_strided_slice %55 {offsets = [0, 15], sizes = [8, 1], strides = [1, 1]} : vector<8x16xf32> to vector<8x1xf32>
    %cst_117 = arith.constant 6.250000e-02 : f32
    %421 = vector.broadcast %cst_117 : f32 to vector<8x1xf32>
    %422 = arith.mulf %420, %421 : vector<8x1xf32>
    %423 = arith.addf %8, %422 : vector<8x1xf32>
    %cst_118 = arith.constant 7.500000e+00 : f32
    %424 = vector.broadcast %cst_118 : f32 to vector<8x1xf32>
    %425 = arith.cmpf oge, %419, %424 : vector<8x1xf32>
    %cst_119 = arith.constant 1.275000e+02 : f32
    %426 = vector.broadcast %cst_119 : f32 to vector<8x1xf32>
    %427 = arith.cmpf ole, %419, %426 : vector<8x1xf32>
    %428 = arith.andi %425, %427 : vector<8x1xi1>
    %cst_120 = arith.constant 7.500000e+00 : f32
    %429 = vector.broadcast %cst_120 : f32 to vector<8x1xf32>
    %430 = arith.cmpf oge, %423, %429 : vector<8x1xf32>
    %431 = arith.andi %428, %430 : vector<8x1xi1>
    %cst_121 = arith.constant 1.275000e+02 : f32
    %432 = vector.broadcast %cst_121 : f32 to vector<8x1xf32>
    %433 = arith.cmpf ole, %423, %432 : vector<8x1xf32>
    %434 = arith.andi %431, %433 : vector<8x1xi1>
    %435 = arith.extui %434 : vector<8x1xi1> to vector<8x1xi32>
    %436 = arith.sitofp %435 : vector<8x1xi32> to vector<8x1xf32>
    %cst_122 = arith.constant 1.000000e+00 : f32
    %437 = vector.broadcast %cst_122 : f32 to vector<8x1xf32>
    %438 = arith.mulf %419, %437 : vector<8x1xf32>
    %cst_123 = arith.constant 1.000000e+00 : f32
    %439 = vector.broadcast %cst_123 : f32 to vector<8x1xf32>
    %440 = arith.mulf %423, %439 : vector<8x1xf32>
    %441 = vector.broadcast %10 : vector<1x256xf32> to vector<8x256xf32>
    %442 = vector.broadcast %438 : vector<8x1xf32> to vector<8x256xf32>
    %443 = arith.subf %441, %442 : vector<8x256xf32>
    %444 = math.absf %443 : vector<8x256xf32>
    %cst_124 = arith.constant 1.000000e+00 : f32
    %445 = vector.broadcast %cst_124 : f32 to vector<8x256xf32>
    %446 = arith.subf %445, %444 : vector<8x256xf32>
    %cst_125 = arith.constant 0.000000e+00 : f32
    %447 = vector.broadcast %cst_125 : f32 to vector<8x256xf32>
    %448 = arith.maximumf %447, %446 : vector<8x256xf32>
    %449 = vector.broadcast %11 : vector<1x256xf32> to vector<8x256xf32>
    %450 = vector.broadcast %440 : vector<8x1xf32> to vector<8x256xf32>
    %451 = arith.subf %449, %450 : vector<8x256xf32>
    %452 = math.absf %451 : vector<8x256xf32>
    %cst_126 = arith.constant 1.000000e+00 : f32
    %453 = vector.broadcast %cst_126 : f32 to vector<8x256xf32>
    %454 = arith.subf %453, %452 : vector<8x256xf32>
    %cst_127 = arith.constant 0.000000e+00 : f32
    %455 = vector.broadcast %cst_127 : f32 to vector<8x256xf32>
    %456 = arith.maximumf %455, %454 : vector<8x256xf32>
    %457 = arith.mulf %448, %456 : vector<8x256xf32>
    %458 = arith.mulf %436, %415 : vector<8x1xf32>
    %459 = vector.broadcast %458 : vector<8x1xf32> to vector<8x256xf32>
    %460 = arith.mulf %457, %459 : vector<8x256xf32>
    %461 = arith.addf %413, %460 : vector<8x256xf32>
    %462 = tpu.concatenate %161, %261, %361, %461 in 0 : vector<8x256xf32>, vector<8x256xf32>, vector<8x256xf32>, vector<8x256xf32> -> vector<32x256xf32>
    %cst_128 = arith.constant dense<0.000000e+00> : vector<32x32xf32>
    %463 = tpu.matmul %462, %6, %cst_128 {dimension_numbers = #tpu.dot_dimension_numbers<[1], [0], [0], [1], [0, 0, 1, 1], [], []>} : vector<32x256xf32>, vector<256x32xf32>, vector<32x32xf32> -> vector<32x32xf32>
    %464 = vector.extract_strided_slice %463 {offsets = [0, 0], sizes = [8, 32], strides = [1, 1]} : vector<32x32xf32> to vector<8x32xf32>
    %c0_129 = arith.constant 0 : index
    %c0_130 = arith.constant 0 : index
    %465 = vector.load %arg6[%c0_129, %c0_130] : memref<4x32xf32, #tpu.memory_space<vmem>>, vector<1x32xf32>
    %466 = vector.broadcast %465 : vector<1x32xf32> to vector<8x32xf32>
    %467 = arith.mulf %464, %466 : vector<8x32xf32>
    %468 = vector.extract_strided_slice %463 {offsets = [8, 0], sizes = [8, 32], strides = [1, 1]} : vector<32x32xf32> to vector<8x32xf32>
    %c1 = arith.constant 1 : index
    %c0_131 = arith.constant 0 : index
    %469 = vector.load %arg6[%c1, %c0_131] : memref<4x32xf32, #tpu.memory_space<vmem>>, vector<1x32xf32>
    %470 = vector.broadcast %469 : vector<1x32xf32> to vector<8x32xf32>
    %471 = arith.mulf %468, %470 : vector<8x32xf32>
    %472 = arith.addf %467, %471 : vector<8x32xf32>
    %473 = vector.extract_strided_slice %463 {offsets = [16, 0], sizes = [8, 32], strides = [1, 1]} : vector<32x32xf32> to vector<8x32xf32>
    %c2 = arith.constant 2 : index
    %c0_132 = arith.constant 0 : index
    %474 = vector.load %arg6[%c2, %c0_132] : memref<4x32xf32, #tpu.memory_space<vmem>>, vector<1x32xf32>
    %475 = vector.broadcast %474 : vector<1x32xf32> to vector<8x32xf32>
    %476 = arith.mulf %473, %475 : vector<8x32xf32>
    %477 = arith.addf %472, %476 : vector<8x32xf32>
    %478 = vector.extract_strided_slice %463 {offsets = [24, 0], sizes = [8, 32], strides = [1, 1]} : vector<32x32xf32> to vector<8x32xf32>
    %c3 = arith.constant 3 : index
    %c0_133 = arith.constant 0 : index
    %479 = vector.load %arg6[%c3, %c0_133] : memref<4x32xf32, #tpu.memory_space<vmem>>, vector<1x32xf32>
    %480 = vector.broadcast %479 : vector<1x32xf32> to vector<8x32xf32>
    %481 = arith.mulf %478, %480 : vector<8x32xf32>
    %482 = arith.addf %477, %481 : vector<8x32xf32>
    %c0_134 = arith.constant 0 : index
    %c0_135 = arith.constant 0 : index
    %c0_136 = arith.constant 0 : index
    %483 = vector.load %arg9[%c0_134, %c0_135, %c0_136] : memref<1x32x32xf32, #tpu.memory_space<vmem>>, vector<1x32x32xf32>
    %484 = vector.shape_cast %483 : vector<1x32x32xf32> to vector<32x32xf32>
    %cst_137 = arith.constant dense<0.000000e+00> : vector<8x32xf32>
    %485 = tpu.matmul %482, %484, %cst_137 {dimension_numbers = #tpu.dot_dimension_numbers<[1], [0], [0], [1], [0, 0, 1, 1], [], []>} : vector<8x32xf32>, vector<32x32xf32>, vector<8x32xf32> -> vector<8x32xf32>
    %c0_i32 = arith.constant 0 : i32
    %486 = arith.cmpi eq, %arg1, %c0_i32 : i32
    %487 = arith.extui %486 : i1 to i32
    %c0_i32_138 = arith.constant 0 : i32
    %488 = arith.cmpi ne, %487, %c0_i32_138 : i32
    scf.if %488 {
      %c0_141 = arith.constant 0 : index
      %c0_142 = arith.constant 0 : index
      %492 = vector.load %arg10[%c0_141, %c0_142] : memref<1x32xf32, #tpu.memory_space<vmem>>, vector<1x32xf32>
      %493 = vector.broadcast %492 : vector<1x32xf32> to vector<8x32xf32>
      %494 = arith.addf %485, %493 : vector<8x32xf32>
      %c0_143 = arith.constant 0 : index
      %c0_144 = arith.constant 0 : index
      %c0_145 = arith.constant 0 : index
      %495 = vector.load %arg11[%c0_143, %c0_144, %c0_145] : memref<1x8x32xf32, #tpu.memory_space<vmem>>, vector<1x8x32xf32>
      %496 = vector.shape_cast %495 : vector<1x8x32xf32> to vector<8x32xf32>
      %497 = vector.shape_cast %494 : vector<8x32xf32> to vector<1x8x32xf32>
      tpu.vector_store %arg11[%c0_143, %c0_144, %c0_145], %497 {strides = array<i32>} : memref<1x8x32xf32, #tpu.memory_space<vmem>>, vector<1x8x32xf32>,
    } else {
    }
    %c0_i32_139 = arith.constant 0 : i32
    %489 = arith.cmpi ne, %arg1, %c0_i32_139 : i32
    %490 = arith.extui %489 : i1 to i32
    %c0_i32_140 = arith.constant 0 : i32
    %491 = arith.cmpi ne, %490, %c0_i32_140 : i32
    scf.if %491 {
      %c0_141 = arith.constant 0 : index
      %c0_142 = arith.constant 0 : index
      %c0_143 = arith.constant 0 : index
      %492 = vector.load %arg11[%c0_141, %c0_142, %c0_143] : memref<1x8x32xf32, #tpu.memory_space<vmem>>, vector<1x8x32xf32>
      %493 = vector.shape_cast %492 : vector<1x8x32xf32> to vector<8x32xf32>
      %494 = arith.addf %493, %485 : vector<8x32xf32>
      %c0_144 = arith.constant 0 : index
      %c0_145 = arith.constant 0 : index
      %c0_146 = arith.constant 0 : index
      %495 = vector.load %arg11[%c0_144, %c0_145, %c0_146] : memref<1x8x32xf32, #tpu.memory_space<vmem>>, vector<1x8x32xf32>
      %496 = vector.shape_cast %495 : vector<1x8x32xf32> to vector<8x32xf32>
      %497 = vector.shape_cast %494 : vector<8x32xf32> to vector<1x8x32xf32>
      tpu.vector_store %arg11[%c0_144, %c0_145, %c0_146], %497 {strides = array<i32>} : memref<1x8x32xf32, #tpu.memory_space<vmem>>, vector<1x8x32xf32>,
    } else {
    }
    return
  }
  func.func @transform_0(%arg0: i32, %arg1: i32) -> (i32, i32, i32) {
    %c0_i32 = arith.constant 0 : i32
    %c0_i32_0 = arith.constant 0 : i32
    %c0_i32_1 = arith.constant 0 : i32
    return %arg0, %c0_i32, %c0_i32_0 : i32, i32, i32
  }
  func.func @transform_1(%arg0: i32, %arg1: i32) -> (i32, i32, i32, i32) {
    %c0_i32 = arith.constant 0 : i32
    %c0_i32_0 = arith.constant 0 : i32
    %c0_i32_1 = arith.constant 0 : i32
    return %arg1, %arg0, %c0_i32, %c0_i32_0 : i32, i32, i32, i32
  }
  func.func @transform_2(%arg0: i32, %arg1: i32) -> (i32, i32, i32, i32) {
    %c0_i32 = arith.constant 0 : i32
    %c0_i32_0 = arith.constant 0 : i32
    %c0_i32_1 = arith.constant 0 : i32
    return %arg1, %arg0, %c0_i32, %c0_i32_0 : i32, i32, i32, i32
  }
  func.func @transform_3(%arg0: i32, %arg1: i32) -> (i32, i32) {
    %c0_i32 = arith.constant 0 : i32
    %c0_i32_0 = arith.constant 0 : i32
    %c0_i32_1 = arith.constant 0 : i32
    return %c0_i32, %c0_i32_0 : i32, i32
  }
  func.func @transform_4(%arg0: i32, %arg1: i32) -> (i32, i32) {
    %c0_i32 = arith.constant 0 : i32
    %c0_i32_0 = arith.constant 0 : i32
    %c0_i32_1 = arith.constant 0 : i32
    return %c0_i32, %c0_i32_0 : i32, i32
  }
  func.func @transform_5(%arg0: i32, %arg1: i32) -> (i32, i32) {
    %c0_i32 = arith.constant 0 : i32
    %c0_i32_0 = arith.constant 0 : i32
    %c0_i32_1 = arith.constant 0 : i32
    return %c0_i32, %c0_i32_0 : i32, i32
  }
  func.func @transform_6(%arg0: i32, %arg1: i32) -> (i32, i32) {
    %c0_i32 = arith.constant 0 : i32
    %c0_i32_0 = arith.constant 0 : i32
    %c0_i32_1 = arith.constant 0 : i32
    return %c0_i32, %c0_i32_0 : i32, i32
  }
  func.func @transform_7(%arg0: i32, %arg1: i32) -> (i32, i32, i32) {
    %c0_i32 = arith.constant 0 : i32
    %c0_i32_0 = arith.constant 0 : i32
    %c0_i32_1 = arith.constant 0 : i32
    return %arg1, %c0_i32, %c0_i32_0 : i32, i32, i32
  }
  func.func @transform_8(%arg0: i32, %arg1: i32) -> (i32, i32) {
    %c0_i32 = arith.constant 0 : i32
    %c0_i32_0 = arith.constant 0 : i32
    %c0_i32_1 = arith.constant 0 : i32
    return %c0_i32, %c0_i32_0 : i32, i32
  }
  func.func @transform_9(%arg0: i32, %arg1: i32) -> (i32, i32, i32) {
    %c0_i32 = arith.constant 0 : i32
    %c0_i32_0 = arith.constant 0 : i32
    %c0_i32_1 = arith.constant 0 : i32
    return %arg0, %c0_i32, %c0_i32_0 : i32, i32, i32
  }
}

</mosaic_0001>

<bundles_post_ra>
// kernel: tpu_custom_call.1
= control target key start
LH: loop header
LB: loop body
LE: loop exit
PB: predicated region body
PF: predicated region fallthrough
CT: control target
= control target key end

     0   :  { %s2305_s0 = inlined_call_operand.vmem [shape: f32[2,8,32], index: 0, kind: input, shape index: {}]   ;;  %s2306_s1 = inlined_call_operand.vmem [shape: f32[2,2,8,2], index: 1, kind: input, shape index: {}]   ;;  %s2307_s2 = inlined_call_operand.vmem [shape: bf16[2,2,256,32], index: 2, kind: input, shape index: {}]   ;;  %s2308_s3 = inlined_call_operand.vmem [shape: f32[2,256], index: 3, kind: input, shape index: {}]   ;;  %s2309_s4 = inlined_call_operand.vmem [shape: f32[4,32], index: 4, kind: input, shape index: {}]   ;;  %s2310_s5 = inlined_call_operand.vmem [shape: f32[32,24], index: 5, kind: input, shape index: {}]   ;;  %s2311_s6 = inlined_call_operand.vmem [shape: f32[1,24], index: 6, kind: input, shape index: {}]   ;;  %s2312_s7 = inlined_call_operand.vmem [shape: f32[2,32,32], index: 7, kind: input, shape index: {}]   ;;  %s2313_s8 = inlined_call_operand.vmem [shape: f32[1,32], index: 8, kind: input, shape index: {}]   ;;  %s2314_s9 = inlined_call_operand.hbm [shape: f32[2,8,32], index: 9, kind: output, shape index: {}]  }
   0x1   :  { %2320 = sst [smem:[#allocation7_spill]] %s2305_s0 }
   0x2   :  { %2321 = sst [smem:[#allocation8_spill]] %s2306_s1 }
   0x3   :  { %2322 = sst [smem:[#allocation9_spill]] %s2307_s2 }
   0x4   :  { %14 = vsyncpa [#allocation3], 0 }
   0x5   :  { %16 = vsyncpa [#allocation3 + $0x1], 0  ;;  %s1770_s30 = smov 0   ;;  %s1772_s10 = smov 0  }
   0x6   :  { %s1774_s11 = smov 0   ;;  %s1776_s12 = smov 0  }
   0x7   :  { %s1778_s13 = smov 0   ;;  %s1780_s14 = smov 0  }
   0x8   :  { %s1782_s15 = smov 0   ;;  %s1784_s16 = smov 0  }
   0x9 LB: > { %s1378_s17 = sadd.s32 4294967295, %s1698_s16   ;;  %s1379_s18 = sadd.s32 4294967294, %s1698_s16   ;;  %s1698_s16 = sphi %s1784_s16, %s22_s16   ;;  %s1694_s15 = sphi %s1782_s15, %s2371_s15   ;;  %s1690_s14 = sphi %s1780_s14, %s2370_s14   ;;  %s1686_s13 = sphi %s1778_s13, %s2369_s13   ;;  %s1682_s12 = sphi %s1776_s12, %s2368_s12   ;;  %s1678_s11 = sphi %s1774_s11, %s2367_s11   ;;  %s1674_s10 = sphi %s1772_s10, %s2366_s10   ;;  %s1670_s30 = sphi %s1770_s30, %s2365_s30  }
   0xa   : > { %s31_s19 = sadd.s32 1, %s1690_s14  ;;  %s34_s20 = sadd.s32 1, %s1694_s15 }
   0xb   : > { %p32_p0 = scmp.ge.s32.totalorder %s31_s19, 2  ;;  %p264_p1 = scmp.ne.s32.totalorder %s1678_s11, %s1674_s10 }
   0xc   : > { %p265_p2 = scmp.eq.s32.totalorder %s1378_s17, 3  ;;  %p270_p4 = scmp.ne.s32.totalorder %s1674_s10, %s1670_s30 }
   0xd   : > { %s2373_s19 = smov (%p32_p0, %s31_s19), 0  ;;  %s2375_s20 = smov (!%p32_p0, %s34_s20), %s1694_s15 }
   0xe   : > { %2323 = sst [smem:[#allocation5_spill]] %s2373_s19  ;;  %p1819_p3 = por %p265_p2, %p264_p1 }
   0xf   : > { %p36_p5 = scmp.ge.s32.totalorder %s2375_s20, 2  ;;  %p271_p6 = scmp.eq.s32.totalorder %s1379_s18, 3 }
  0x10   : > { %p1382_p7 = scmp.ge.s32.totalorder %s1698_s16, 1  ;;  %p342_p8 = scmp.lt.s32.totalorder %s1698_s16, 5 }
  0x11   : > { %s2377_s20 = smov (%p36_p5, %s2375_s20), 0  ;;  %p1829_p9 = por %p271_p6, %p270_p4 }
  0x12   : > { %2325 = sst [smem:[#allocation6_spill]] %s2377_s20  ;;  %p343_p10 = pnand %p1382_p7, %p342_p8 }
  0x13   : > { %s251_s23 = ssub.s32 %s1694_s15, %s2377_s20  ;;  %s254_s24 = sadd.s32 1, %s1678_s11 }
  0x14   : > { %p252_p11 = scmp.eq.s32.totalorder %s251_s23, 0  ;;  %346 = sbr.rel (%p343_p10) target bundleno = 1423 (0x58f), region = 56 }
  0x15   : > { %p399_p12 = scmp.lt.s32.totalorder (!%p343_p10), %s1686_s13, 1  ;;  %p403_p13 = scmp.lt.s32.totalorder (!%p343_p10), %s1682_s12, 1 }
  0x16   : > { %s1837_s25 = scalar_select %p252_p11, %s1678_s11, %s254_s24  }
  0x17   : > { %s2327_s1 = sld [smem:[#allocation8_spill]] (!%p343_p10)  ;;  %s2316_s20 = sand.u32 (!%p343_p10), 1, %s1674_s10  }
  0x18   : > { %s2328_s2 = sld [smem:[#allocation9_spill]] (!%p343_p10)  ;;  %p1403_p0 = scmp.ne.s32.totalorder (!%p343_p10), %s1682_s12, 0 }
  0x19   : > { %v1700_v0 = vmov 0   ;;  %s1844_s26 = scalar_select %p399_p12, %s1686_s13, 1  ;;  %v1701_v1 = vmov 1   ;;  %v1703_v53 = vmov 0.0   ;;  %v491_v58 = vld [vmem:[%s2308_s3] sm:$0xf] }
  0x1a   : > { %1580 = vset.pattern.permute.xlu1 %v1700_v0  ;;  %1582 = vset.pattern.permute.xlu2 %v1700_v0  ;;  %s1848_s27 = scalar_select %p403_p13, %s1682_s12, 1  ;;  %v597_v59 = vld [vmem:[%s2310_s5 + $0x18] sm:$0xff]  ;;  %v596_v60 = vld [vmem:[%s2310_s5 + $0x10] sm:$0xff]  ;;  %v508_v61 = vperm.slane %v491_v58, 0  ;;  %v509_v62 = vperm.slane %v491_v58, 2  ;;  %v527_v63 = vperm.slane %v491_v58, 1 }
  0x1b   : > { %1583 = vset.pattern.permute.xlu0 %v1701_v1  ;;  %s2329_s0 = sld [smem:[#allocation7_spill]]  ;;  %vm2319_vm7 = vcmask 261120   ;;  %vm626_vm8 = vcmask 195712  }
  0x1c   : > { %s1385_s28 = sshll.u32 %s1848_s27, 1  ;;  %s1388_s18 = sshll.u32 %s1848_s27, 6 }
  0x1d   : > { %s408_s29 = sadd.s32 %s1385_s28, %s1844_s26  ;;  %s1865_s28 = sshll.u32 %s2316_s20, 3 }
  0x1e   : > { %s1386_s17 = sshll.u32 %s408_s29, 3  ;;  %s2317_s29 = smov 127  }
  0x1f   : > { %s410_s24 = scalar_lea.vmem %s2327_s1, %s1386_s17  ;;  %s1387_s17 = sshll.u32 %s1844_s26, 5 }
  0x20   : > { %v1855_v2 = vld [vmem:[%s410_s24] sm:$0xff]  ;;  %s417_s23 = sadd.s32 %s1388_s18, %s1387_s17  ;;  %s1384_s17 = sshll.u32 %s1844_s26, 3 }
  0x21   : > { %vm492_vm0 = vcmp.ge.f32.partialorder %v1855_v2, 7.5  ;;  %516 = vperm.xlu1 %1580, %v1855_v2   ;;  %vm493_vm1 = vcmp.le.f32.partialorder %v1855_v2, 127.5  ;;  %s1389_s24 = sshll.u32 %s417_s23, 2  ;;  %s1704_s26 = smov 126  }
  0x22   : > { %v495_v3 = vsel %vm492_vm0, 1, %v1700_v0  ;;  %v500_v4 = vsel %vm493_vm1, 1, %v1700_v0  ;;  %s1880_s19 = scalar_lea.vmem %s2328_s2, %s1389_s24  ;;  %vm494_vm2 = vmand %vm492_vm0, %vm493_vm1  ;;  %s1707_s20 = smov 116  }
  0x23   : > { %496 = vrot.lane.b32.xlu0 %v495_v3, %s2317_s29  ;;  %v1480_v5 = vld [vmem:[%s1880_s19 + $0x38] sm:$0xff]   ;;  %v1479_v9 = vld [vmem:[%s1880_s19 + $0x30] sm:$0xff]   ;;  %v1478_v15 = vld [vmem:[%s1880_s19 + $0x28] sm:$0xff]   ;;  %v528_v3 = vperm.slane %v491_v58, 3  ;;  %s1708_s18 = smov 122   ;;  %s1709_s23 = smov 118  }
  0x24   : > { %v1488_v6 = vld [vmem:[%s1880_s19 + $0x78] sm:$0xff]   ;;  %v1441_v7 = vunpack.c.h.bf16 %v1480_v5  ;;  %v1487_v10 = vld [vmem:[%s1880_s19 + $0x70] sm:$0xff]   ;;  %v1440_v11 = vunpack.c.l.bf16 %v1480_v5  ;;  %v1437_v13 = vunpack.c.h.bf16 %v1479_v9  ;;  %v1486_v16 = vld [vmem:[%s1880_s19 + $0x68] sm:$0xff]   ;;  %v1436_v17 = vunpack.c.l.bf16 %v1479_v9  ;;  %s1710_s24 = smov 114   ;;  %s1711_s1 = smov 1  }
  0x25   : > { %v1473_v8 = vunpack.c.h.bf16 %v1488_v6  ;;  %v1472_v12 = vunpack.c.l.bf16 %v1488_v6  ;;  %v1469_v14 = vunpack.c.h.bf16 %v1487_v10  ;;  %v1468_v18 = vunpack.c.l.bf16 %v1487_v10  ;;  %v1477_v21 = vld [vmem:[%s1880_s19 + $0x20] sm:$0xff]   ;;  %v1476_v27 = vld [vmem:[%s1880_s19 + $0x18] sm:$0xff]   ;;  %v1475_v33 = vld [vmem:[%s1880_s19 + $0x10] sm:$0xff]  }
  0x26   : > { %554 = vmatpush.msra.mxu0 %v1441_v7  ;;  %1124 = vmatpush.msra.mxu3 %v1441_v7  ;;  %v1433_v19 = vunpack.c.h.bf16 %v1478_v15  ;;  %v1465_v20 = vunpack.c.h.bf16 %v1486_v16  ;;  %v1485_v22 = vld [vmem:[%s1880_s19 + $0x60] sm:$0xff]   ;;  %v1432_v23 = vunpack.c.l.bf16 %v1478_v15  ;;  %v1464_v24 = vunpack.c.l.bf16 %v1486_v16  ;;  %v1484_v28 = vld [vmem:[%s1880_s19 + $0x58] sm:$0xff]   ;;  %v1483_v34 = vld [vmem:[%s1880_s19 + $0x50] sm:$0xff]  }
  0x27   : > { %574 = vmatpush.msra.mxu1 %v1473_v8  ;;  %1153 = vmatpush.msra.mxu2 %v1473_v8  ;;  %v1429_v25 = vunpack.c.h.bf16 %v1477_v21  ;;  %v1461_v26 = vunpack.c.h.bf16 %v1485_v22  ;;  %v1428_v29 = vunpack.c.l.bf16 %v1477_v21  ;;  %v1460_v30 = vunpack.c.l.bf16 %v1485_v22  ;;  %v1474_v40 = vld [vmem:[%s1880_s19 + $0x8] sm:$0xff]   ;;  %v1411_v46 = vld [vmem:[%s1880_s19] sm:$0xff]  }
  0x28   : > { %555 = vmatpush.msra.mxu0 %v1440_v11  ;;  %1125 = vmatpush.msra.mxu3 %v1440_v11  ;;  %v1425_v31 = vunpack.c.h.bf16 %v1476_v27  ;;  %v1457_v32 = vunpack.c.h.bf16 %v1484_v28  ;;  %v1424_v35 = vunpack.c.l.bf16 %v1476_v27  ;;  %v1456_v36 = vunpack.c.l.bf16 %v1484_v28  ;;  %v1482_v41 = vld [vmem:[%s1880_s19 + $0x48] sm:$0xff]   ;;  %v1481_v47 = vld [vmem:[%s1880_s19 + $0x40] sm:$0xff]   ;;  %s1706_s19 = smov 120  }
  0x29   : > { %1581 = vset.pattern.permute.xlu1 %v1701_v1  ;;  %575 = vmatpush.msra.mxu1 %v1472_v12  ;;  %v1421_v37 = vunpack.c.h.bf16 %v1475_v33  ;;  %v1453_v38 = vunpack.c.h.bf16 %v1483_v34  ;;  %v1420_v42 = vunpack.c.l.bf16 %v1475_v33  ;;  %v1452_v43 = vunpack.c.l.bf16 %v1483_v34 }
  0x2a   : > { %534 = vperm.xlu1 %1581, %v1855_v2   ;;  %1154 = vmatpush.msra.mxu2 %v1472_v12  ;;  %v1417_v44 = vunpack.c.h.bf16 %v1474_v40  ;;  %v1449_v45 = vunpack.c.h.bf16 %v1482_v41  ;;  %v1416_v48 = vunpack.c.l.bf16 %v1474_v40  ;;  %v1448_v49 = vunpack.c.l.bf16 %v1482_v41 }
  0x2b   : > { %501 = vrot.lane.b32.xlu0 %v500_v4, %s2317_s29  ;;  %556 = vmatpush.msra.mxu0 %v1437_v13  ;;  %v1413_v50 = vunpack.c.h.bf16 %v1411_v46  ;;  %v1445_v51 = vunpack.c.h.bf16 %v1481_v47  ;;  %v1412_v55 = vunpack.c.l.bf16 %v1411_v46  ;;  %v1444_v56 = vunpack.c.l.bf16 %v1481_v47  ;;  %s402_s29 = scalar_lea.vmem %s2329_s0, %s1384_s17  ;;  %s2332_s17 = smov 127  }
  0x2c   : > { %576 = vmatpush.msra.mxu1 %v1469_v14  ;;  %1126 = vmatpush.msra.mxu3 %v1437_v13  ;;  %v1912_v4 = vperm.slane %v508_v61, 0  ;;  %v1914_v5 = vperm.slane %v509_v62, 0  ;;  %v1916_v6 = vperm.slane %v527_v63, 1  ;;  %v1918_v7 = vperm.slane %v528_v3, 1 }
  0x2d   : > { %1155 = vmatpush.msra.mxu2 %v1469_v14  ;;  %557 = vmatpush.msra.mxu0 %v1436_v17 }
  0x2e   : > { %577 = vmatpush.msra.mxu1 %v1468_v18  ;;  %1127 = vmatpush.msra.mxu3 %v1436_v17 }
  0x2f   : > { %1156 = vmatpush.msra.mxu2 %v1468_v18  ;;  %558 = vmatpush.msra.mxu0 %v1433_v19 }
  0x30   : > { %578 = vmatpush.msra.mxu1 %v1465_v20  ;;  %1128 = vmatpush.msra.mxu3 %v1433_v19 }
  0x31   : > { %1157 = vmatpush.msra.mxu2 %v1465_v20  ;;  %559 = vmatpush.msra.mxu0 %v1432_v23 }
  0x32   : > { %579 = vmatpush.msra.mxu1 %v1464_v24  ;;  %1129 = vmatpush.msra.mxu3 %v1432_v23 }
  0x33   : > { %1158 = vmatpush.msra.mxu2 %v1464_v24  ;;  %560 = vmatpush.msra.mxu0 %v1429_v25 }
  0x34   : > { %580 = vmatpush.msra.mxu1 %v1461_v26  ;;  %1130 = vmatpush.msra.mxu3 %v1429_v25 }
  0x35   : > { %1159 = vmatpush.msra.mxu2 %v1461_v26  ;;  %561 = vmatpush.msra.mxu0 %v1428_v29 }
  0x36   : > { %581 = vmatpush.msra.mxu1 %v1460_v30  ;;  %1131 = vmatpush.msra.mxu3 %v1428_v29 }
  0x37   : > { %1160 = vmatpush.msra.mxu2 %v1460_v30  ;;  %562 = vmatpush.msra.mxu0 %v1425_v31  ;;  %v595_v30 = vld [vmem:[%s2310_s5 + $0x8] sm:$0xff] }
  0x38   : > { %582 = vmatpush.msra.mxu1 %v1457_v32  ;;  %1132 = vmatpush.msra.mxu3 %v1425_v31  ;;  %v594_v31 = vld [vmem:[%s2310_s5] sm:$0xff] }
  0x39   : > { %1161 = vmatpush.msra.mxu2 %v1457_v32  ;;  %563 = vmatpush.msra.mxu0 %v1424_v35  ;;  %v425_v32 = vld [vmem:[%s402_s29] sm:$0xff]  ;;  %s1705_s29 = smov 124  }
  0x3a   : > { %583 = vmatpush.msra.mxu1 %v1456_v36  ;;  %1133 = vmatpush.msra.mxu3 %v1424_v35 }
  0x3b   : > { %1162 = vmatpush.msra.mxu2 %v1456_v36  ;;  %564 = vmatpush.msra.mxu0 %v1421_v37 }
  0x3c   : > { %584 = vmatpush.msra.mxu1 %v1453_v38  ;;  %1134 = vmatpush.msra.mxu3 %v1421_v37  ;;  %v1594_v37 = vld [vmem:[%s2311_s6] ss:$0 sm:$0xff] }
  0x3d   : > { %1163 = vmatpush.msra.mxu2 %v1453_v38  ;;  %565 = vmatpush.msra.mxu0 %v1420_v42 }
  0x3e   : > { %585 = vmatpush.msra.mxu1 %v1452_v43  ;;  %1135 = vmatpush.msra.mxu3 %v1420_v42 }
  0x3f   : > { %1164 = vmatpush.msra.mxu2 %v1452_v43  ;;  %566 = vmatpush.msra.mxu0 %v1417_v44 }
  0x40   : > { %586 = vmatpush.msra.mxu1 %v1449_v45  ;;  %1136 = vmatpush.msra.mxu3 %v1417_v44 }
  0x41   : > { %1165 = vmatpush.msra.mxu2 %v1449_v45  ;;  %567 = vmatpush.msra.mxu0 %v1416_v48 }
  0x42   : > { %587 = vmatpush.msra.mxu1 %v1448_v49  ;;  %1137 = vmatpush.msra.mxu3 %v1416_v48 }
  0x43   : > { %1166 = vmatpush.msra.mxu2 %v1448_v49  ;;  %568 = vmatpush.msra.mxu0 %v1413_v50 }
  0x44   : > { %588 = vmatpush.msra.mxu1 %v1445_v51  ;;  %1138 = vmatpush.msra.mxu3 %v1413_v50 }
  0x45   : > { %1167 = vmatpush.msra.mxu2 %v1445_v51  ;;  %569 = vmatpush.msra.mxu0 %v1412_v55 }
  0x46   : > { %589 = vmatpush.msra.mxu1 %v1444_v56  ;;  %1139 = vmatpush.msra.mxu3 %v1412_v55 }
  0x47   : > { %1168 = vmatpush.msra.mxu2 %v1444_v56 }
  0x48   : > { %618 = vmatpush.msrb.mxu1 %v597_v59 }
  0x4a   : > { %619 = vmatpush.msrb.mxu1 %v596_v60 }
  0x4c   : > { %620 = vmatpush.msrb.mxu1 %v595_v30 }
  0x4e   : > { %621 = vmatpush.msrb.mxu1 %v594_v31 }
  0x93   : > { %v517_v57 = vpop.permute.xlu1 %516 }
  0x94   : > { %v519_v9 = vsub.f32 %v1912_v4, %v517_v57  ;;  %v520_v10 = vsub.f32 %v1914_v5, %v517_v57 }
  0x95   : > { %v497_v39 = vpop.permute.xlu0 %496 }
  0x96   : > { %vm498_vm3 = vcmp.ne.s32.totalorder %v497_v39, 0  ;;  %v521_v13 = vand.u32 2147483647, %v519_v9  ;;  %v522_v14 = vand.u32 2147483647, %v520_v10 }
  0x97   : > { %vm499_vm4 = vmand %vm494_vm2, %vm498_vm3 }
  0x98   : > { %v523_v17 = vsub.f32 1.0, %v521_v13  ;;  %v524_v18 = vsub.f32 1.0, %v522_v14 }
  0x9a   : > { %v525_v21 = vmax.f32 %v523_v17, 0.0  ;;  %v526_v22 = vmax.f32 %v524_v18, 0.0 }
  0x9c   : > { %v535_v8 = vpop.permute.xlu1 %534 }
  0x9d   : > { %v502_v52 = vpop.permute.xlu0 %501  ;;  %v537_v11 = vsub.f32 %v1916_v6, %v535_v8  ;;  %v538_v12 = vsub.f32 %v1918_v7, %v535_v8 }
  0x9e   : > { %vm503_vm5 = vcmp.ne.s32.totalorder %v502_v52, 0 }
  0x9f   : > { %vm504_vm6 = vmand %vm499_vm4, %vm503_vm5  ;;  %v539_v15 = vand.u32 2147483647, %v537_v11  ;;  %v540_v16 = vand.u32 2147483647, %v538_v12 }
  0xa0   : > { %v1392_v54 = vsel %vm504_vm6, 1.0, %v1703_v53 }
  0xa1   : > { %549 = vperm.xlu2 %1582, %v1392_v54   ;;  %v541_v19 = vsub.f32 1.0, %v539_v15  ;;  %v542_v20 = vsub.f32 1.0, %v540_v16 }
  0xa3   : > { %v543_v23 = vmax.f32 %v541_v19, 0.0  ;;  %v544_v24 = vmax.f32 %v542_v20, 0.0 }
  0xa5   : > { %v545_v25 = vmul.f32 %v543_v23, %v525_v21  ;;  %v546_v26 = vmul.f32 %v544_v24, %v526_v22 }
  0xfb   : > { %v550_v27 = vpop.permute.xlu2 %549 }
  0xfc   : > { %v552_v28 = vmul.f32 %v550_v27, %v545_v25  ;;  %v553_v29 = vmul.f32 %v550_v27, %v546_v26 }
  0xfe   : > { %570 = vmatmul.f32.vlgmr.msra.gmra.mxu0 %v552_v28  ;;  %590 = vmatmul.f32.vlgmr.msra.gmra.mxu1 %v553_v29 }
 0x17b   : > { %v571_v33 = vpop.f32.mrf.mxu0  ;;  %v591_v35 = vpop.f32.mrf.mxu1 }
 0x17c   : > { %v572_v34 = vadd.f32 %v571_v33, %v425_v32 }
 0x17e   : > { %v592_v36 = vadd.f32 %v591_v35, %v572_v34 }
 0x180   : > { %1393 = vmatmul.msk.f32.vlgmr.msrb.gmra.mxu1 %vm2319_vm7, %v592_v36 }
 0x1fd   : > { %v623_v38 = vpop.f32.mrf.mxu1 }
 0x1fe   : > { %v624_v39 = vadd.f32 %v1594_v37, %v623_v38 }
 0x200   : > { %v654_v40 = vmul.f32 0.0625, %v624_v39  ;;  %v627_v41 = vsel %vm626_vm8, %v624_v39, -inf }
 0x201   : > { %628 = vmax.xlane.f32.xlu2 %v627_v41 }
 0x202   : > { %716 = vrot.lane.b32.xlu1 %v654_v40, %s1704_s26  ;;  %v1939_v42 = vadd.f32 %v654_v40, %v1855_v2  ;;  %s1712_s26 = smov 110  }
 0x204   : > { %vm656_vm9 = vcmp.ge.f32.partialorder %v1939_v42, 7.5  ;;  %vm657_vm10 = vcmp.le.f32.partialorder %v1939_v42, 127.5 }
 0x205   : > { %vm1945_vm11 = vmand %vm656_vm9, %vm657_vm10  ;;  %v659_v44 = vsel %vm656_vm9, 1, %v1700_v0  ;;  %v664_v10 = vsel %vm657_vm10, 1, %v1700_v0 }
 0x20a   : > { %776 = vrot.lane.b32.xlu1 %v654_v40, %s1705_s29  ;;  %s1713_s29 = smov 108  }
 0x212   : > { %892 = vrot.lane.b32.xlu1 %v654_v40, %s1706_s19  ;;  %s1714_s19 = smov 112  }
 0x21a   : > { %1008 = vrot.lane.b32.xlu1 %v654_v40, %s1707_s20  ;;  %s1715_s20 = smov 106  }
 0x222   : > { %660 = vrot.lane.b32.xlu1 %v659_v44, %s2332_s17 }
 0x274   : > { %v717_v45 = vpop.permute.xlu1 %716  ;;  %v629_v46 = vpop.xlane.xlu2 %628 }
 0x275   : > { %v1952_v47 = vadd.f32 %v717_v45, %v1855_v2  ;;  %v630_v48 = vsub.f32 %v624_v39, %v629_v46 }
 0x277   : > { %v631_v49 = vmul.f32 1.442695, %v630_v48  ;;  %vm721_vm12 = vcmp.le.f32.partialorder %v1952_v47, 127.5  ;;  %vm720_vm13 = vcmp.ge.f32.partialorder %v1952_v47, 7.5 }
 0x278   : > { %v728_v50 = vsel %vm721_vm12, 1, %v1700_v0  ;;  %v723_v51 = vsel %vm720_vm13, 1, %v1700_v0  ;;  %vm1958_vm14 = vmand %vm720_vm13, %vm721_vm12 }
 0x279   : > { %1599 = vpow2.f32 %v631_v49  ;;  %729 = vrot.lane.b32.xlu1 %v728_v50, %s2332_s17  ;;  %724 = vrot.lane.b32.xlu2 %v723_v51, %s2332_s17 }
 0x27c   : > { %v777_v54 = vpop.permute.xlu1 %776 }
 0x27d   : > { %v1965_v55 = vadd.f32 %v777_v54, %v1855_v2 }
 0x27f   : > { %v1967_v56 = vpop.eup %1599  ;;  %vm781_vm15 = vcmp.le.f32.partialorder %v1965_v55, 127.5  ;;  %vm780_vm0 = vcmp.ge.f32.partialorder %v1965_v55, 7.5 }
 0x280   : > { %634 = vrot.lane.b32.xlu0 %v1967_v56, %s2332_s17  ;;  %v788_v57 = vsel %vm781_vm15, 1, %v1700_v0  ;;  %vm1976_vm1 = vmand %vm780_vm0, %vm781_vm15  ;;  %v783_v11 = vsel %vm780_vm0, 1, %v1700_v0 }
 0x281   : > { %789 = vrot.lane.b32.xlu2 %v788_v57, %s2332_s17 }
 0x284   : > { %v893_v59 = vpop.permute.xlu1 %892 }
 0x285   : > { %v1982_v60 = vadd.f32 %v893_v59, %v1855_v2 }
 0x287   : > { %vm897_vm2 = vcmp.le.f32.partialorder %v1982_v60, 127.5  ;;  %vm896_vm3 = vcmp.ge.f32.partialorder %v1982_v60, 7.5 }
 0x288   : > { %833 = vrot.lane.b32.xlu0 %v654_v40, %s1708_s18  ;;  %v904_v61 = vsel %vm897_vm2, 1, %v1700_v0  ;;  %vm1989_vm4 = vmand %vm896_vm3, %vm897_vm2  ;;  %s1717_s18 = smov 111  }
 0x289   : > { %905 = vrot.lane.b32.xlu2 %v904_v61, %s2332_s17 }
 0x28c   : > { %v1009_v63 = vpop.permute.xlu1 %1008 }
 0x28d   : > { %v1995_v3 = vadd.f32 %v1009_v63, %v1855_v2 }
 0x28f   : > { %vm1013_vm5 = vcmp.le.f32.partialorder %v1995_v3, 127.5  ;;  %vm1012_vm6 = vcmp.ge.f32.partialorder %v1995_v3, 7.5 }
 0x290   : > { %949 = vrot.lane.b32.xlu0 %v654_v40, %s1709_s23  ;;  %v1020_v8 = vsel %vm1013_vm5, 1, %v1700_v0  ;;  %vm2002_vm8 = vmand %vm1012_vm6, %vm1013_vm5  ;;  %v1015_v41 = vsel %vm1012_vm6, 1, %v1700_v0  ;;  %s1718_s23 = smov 107  }
 0x291   : > { %1021 = vrot.lane.b32.xlu2 %v1020_v8, %s2332_s17 }
 0x294   : > { %v661_v45 = vpop.permute.xlu1 %660 }
 0x298   : > { %1065 = vrot.lane.b32.xlu0 %v654_v40, %s1710_s24  ;;  %s1719_s24 = smov 105  }
 0x299   : > { %737 = vperm.xlu2 %1582, %v1952_v47  }
 0x2a0   : > { %665 = vrot.lane.b32.xlu0 %v664_v10, %s2332_s17 }
 0x2a1   : > { %797 = vperm.xlu2 %1582, %v1965_v55  }
 0x2a8   : > { %784 = vrot.lane.b32.xlu0 %v783_v11, %s2332_s17 }
 0x2a9   : > { %1586 = vset.pattern.permute.xlu2 %v1701_v1 }
 0x2d3   : > { %v725_v12 = vpop.permute.xlu2 %724 }
 0x2d4   : > { %vm726_vm9 = vcmp.ne.s32.totalorder %v725_v12, 0 }
 0x2d5   : > { %vm2020_vm12 = vmand %vm1958_vm14, %vm726_vm9 }
 0x2eb   : > { %v2093_v48 = vpop.permute.xlu1 %729 }
 0x2f2   : > { %v635_v14 = vpop.permute.xlu0 %634 }
 0x2f3   : > { %v637_v15 = vadd.f32 %v1967_v56, %v635_v14 }
 0x2f5   : > { %1601 = vrcp.f32 %v637_v15  ;;  %v649_v23 = vand.u32 2147483648, %v637_v15  ;;  %v647_v25 = vand.u32 2147483647, %v637_v15  ;;  %vm643_vm0 = vweird.f32 %v637_v15 }
 0x2f7   : > { %v650_v29 = vor.u32 1.1754944e-38, %v649_v23  ;;  %vm648_vm5 = vcmp.eq.f32.partialorder %v647_v25, 8.507059e+37 }
 0x2fa   : > { %v834_v16 = vpop.permute.xlu0 %833 }
 0x2fb   : > { %v1602_v17 = vpop.eup %1601  ;;  %v2026_v18 = vadd.f32 %v834_v16, %v1855_v2 }
 0x2fc   : > { %v639_v19 = vmul.f32 %v1602_v17, %v637_v15  ;;  %vm644_vm15 = vweird.f32 %v1602_v17 }
 0x2fd   : > { %866 = vperm.xlu2 %1586, %v2026_v18   ;;  %vm837_vm10 = vcmp.ge.f32.partialorder %v2026_v18, 7.5  ;;  %vm838_vm13 = vcmp.le.f32.partialorder %v2026_v18, 127.5  ;;  %vm645_vm2 = vmor %vm643_vm0, %vm644_vm15 }
 0x2fe   : > { %v840_v20 = vsel %vm837_vm10, 1, %v1700_v0  ;;  %v640_v21 = vsub.f32 1.0, %v639_v19  ;;  %vm2034_vm14 = vmand %vm837_vm10, %vm838_vm13  ;;  %v845_v36 = vsel %vm838_vm13, 1, %v1700_v0 }
 0x2ff   : > { %841 = vrot.lane.b32.xlu1 %v840_v20, %s2332_s17 }
 0x300   : > { %v641_v24 = vmul.f32 %v1602_v17, %v640_v21 }
 0x302   : > { %v950_v26 = vpop.permute.xlu0 %949  ;;  %v642_v27 = vadd.f32 %v1602_v17, %v641_v24 }
 0x303   : > { %v2040_v28 = vadd.f32 %v950_v26, %v1855_v2 }
 0x304   : > { %v646_v30 = vsel %vm645_vm2, %v1602_v17, %v642_v27 }
 0x305   : > { %v651_v31 = vsel %vm648_vm5, %v650_v29, %v646_v30  ;;  %vm953_vm9 = vcmp.ge.f32.partialorder %v2040_v28, 7.5  ;;  %vm954_vm10 = vcmp.le.f32.partialorder %v2040_v28, 127.5  ;;  %1588 = vset.pattern.permute.xlu2 %v1700_v0 }
 0x306   : > { %711 = vrot.lane.b32.xlu0 %v651_v31, %s1711_s1  ;;  %v956_v32 = vsel %vm953_vm9, 1, %v1700_v0  ;;  %vm2048_vm7 = vmand %vm953_vm9, %vm954_vm10  ;;  %v653_v39 = vmul.f32 %v1967_v56, %v651_v31  ;;  %v961_v40 = vsel %vm954_vm10, 1, %v1700_v0  ;;  %s1409_s1 = sshll.u32 %s1848_s27, 5 }
 0x307   : > { %957 = vrot.lane.b32.xlu1 %v956_v32, %s2332_s17 }
 0x30a   : > { %v1066_v34 = vpop.permute.xlu0 %1065 }
 0x30b   : > { %v2054_v35 = vadd.f32 %v1066_v34, %v1855_v2  ;;  %v899_v2 = vsel %vm896_vm3, 1, %v1700_v0 }
 0x30d   : > { %vm1069_vm15 = vcmp.ge.f32.partialorder %v2054_v35, 7.5  ;;  %vm1070_vm0 = vcmp.le.f32.partialorder %v2054_v35, 127.5 }
 0x30e   : > { %846 = vrot.lane.b32.xlu0 %v845_v36, %s2332_s17  ;;  %v1072_v37 = vsel %vm1069_vm15, 1, %v1700_v0  ;;  %vm2065_vm2 = vmand %vm1069_vm15, %vm1070_vm0  ;;  %v1077_v44 = vsel %vm1070_vm0, 1, %v1700_v0 }
 0x30f   : > { %1073 = vrot.lane.b32.xlu1 %v1072_v37, %s2332_s17 }
 0x312   : > { %v666_v46 = vpop.permute.xlu0 %665 }
 0x316   : > { %900 = vrot.lane.b32.xlu0 %v899_v2, %s2332_s17 }
 0x317   : > { %685 = vperm.xlu1 %1581, %v1939_v42  }
 0x31a   : > { %v785_v49 = vpop.permute.xlu0 %784 }
 0x31e   : > { %962 = vrot.lane.b32.xlu0 %v961_v40, %s2332_s17 }
 0x31f   : > { %822 = vrot.lane.b32.xlu1 %v653_v39, %s1712_s26 }
 0x326   : > { %1016 = vrot.lane.b32.xlu0 %v1015_v41, %s2332_s17 }
 0x327   : > { %938 = vrot.lane.b32.xlu1 %v653_v39, %s1713_s29  ;;  %s398_s29 = scalar_lea.vmem [#allocation2], %s1865_s28 }
 0x32e   : > { %699 = vrot.lane.b32.xlu0 %v653_v39, %s1714_s19  ;;  %s424_s19 = scalar_lea.vmem %s2312_s7, %s1409_s1 }
 0x32f   : > { %1054 = vrot.lane.b32.xlu1 %v653_v39, %s1715_s20 }
 0x336   : > { %1078 = vrot.lane.b32.xlu0 %v1077_v44, %s2332_s17  ;;  %s1716_s17 = smov 109  }
 0x33e   : > { %809 = vperm.xlu0 %1583, %v1965_v55   ;;  %v790_v55 = vpop.permute.xlu2 %789 }
 0x346   : > { %1584 = vset.pattern.permute.xlu0 %v1700_v0  ;;  %v906_v63 = vpop.permute.xlu2 %905 }
 0x347   : > { %673 = vperm.xlu0 %1584, %v1939_v42   ;;  %vm907_vm0 = vcmp.ne.s32.totalorder %v906_v63, 0 }
 0x34e   : > { %v1022_v21 = vpop.permute.xlu2 %1021 }
 0x34f   : > { %913 = vperm.xlu0 %1584, %v1982_v60  }
 0x356   : > { %v738_v43 = vpop.permute.xlu2 %737 }
 0x357   : > { %1086 = vperm.xlu0 %1584, %v2054_v35   ;;  %v740_v41 = vsub.f32 %v1912_v4, %v738_v43 }
 0x359   : > { %v742_v44 = vand.u32 2147483647, %v740_v41 }
 0x35e   : > { %v798_v25 = vpop.permute.xlu2 %797 }
 0x366   : > { %v2152_v26 = vpop.permute.xlu2 %866 }
 0x371   : > { %v842_v50 = vpop.permute.xlu1 %841 }
 0x372   : > { %vm843_vm3 = vcmp.ne.s32.totalorder %v842_v50, 0 }
 0x373   : > { %vm844_vm6 = vmand %vm2034_vm14, %vm843_vm3 }
 0x378   : > { %v712_v51 = vpop.permute.xlu0 %711 }
 0x379   : > { %v714_v52 = vmul.f32 %v1967_v56, %v712_v51  ;;  %v958_v54 = vpop.permute.xlu1 %957 }
 0x37a   : > { %vm959_vm13 = vcmp.ne.s32.totalorder %v958_v54, 0 }
 0x37b   : > { %vm2100_vm5 = vmand %vm2048_vm7, %vm959_vm13  ;;  %879 = vrot.lane.b32.xlu2 %v714_v52, %s1716_s17  ;;  %763 = vrot.lane.b32.xlu1 %v714_v52, %s1717_s18 }
 0x380   : > { %v847_v57 = vpop.permute.xlu0 %846 }
 0x381   : > { %vm848_vm9 = vcmp.ne.s32.totalorder %v847_v57, 0  ;;  %v1074_v59 = vpop.permute.xlu1 %1073 }
 0x382   : > { %vm2104_vm14 = vmand %vm844_vm6, %vm848_vm9  ;;  %vm1075_vm10 = vcmp.ne.s32.totalorder %v1074_v59, 0  ;;  %vm786_vm6 = vcmp.ne.s32.totalorder %v785_v49, 0 }
 0x383   : > { %vm2110_vm15 = vmand %vm2065_vm2, %vm1075_vm10  ;;  %995 = vrot.lane.b32.xlu2 %v714_v52, %s1718_s23  ;;  %749 = vperm.xlu1 %1581, %v1952_v47   ;;  %vm791_vm10 = vcmp.ne.s32.totalorder %v790_v55, 0  ;;  %v1397_v9 = vsel %vm2104_vm14, 1.0, %v1703_v53  ;;  %v744_v55 = vsub.f32 1.0, %v742_v44 }
 0x384   : > { %vm787_vm13 = vmand %vm1976_vm1, %vm786_vm6  ;;  %vm662_vm1 = vcmp.ne.s32.totalorder %v661_v45, 0 }
 0x388   : > { %v901_v8 = vpop.permute.xlu0 %900 }
 0x389   : > { %vm902_vm7 = vcmp.ne.s32.totalorder %v901_v8, 0  ;;  %v2115_v10 = vpop.permute.xlu1 %685 }
 0x38a   : > { %vm903_vm3 = vmand %vm1989_vm4, %vm902_vm7  ;;  %v688_v50 = vsub.f32 %v1916_v6, %v2115_v10  ;;  %v689_v42 = vsub.f32 %v1918_v7, %v2115_v10 }
 0x38b   : > { %1111 = vrot.lane.b32.xlu2 %v714_v52, %s1719_s24  ;;  %1585 = vset.pattern.permute.xlu1 %v1700_v0  ;;  %vm2120_vm2 = vmand %vm903_vm3, %vm907_vm0 }
 0x38c   : > { %854 = vperm.xlu1 %1585, %v2026_v18   ;;  %vm792_vm7 = vmand %vm787_vm13, %vm791_vm10  ;;  %v1398_v17 = vsel %vm2120_vm2, 1.0, %v1703_v53  ;;  %v690_v62 = vand.u32 2147483647, %v688_v50 }
 0x38d   : > { %v1396_v14 = vsel %vm792_vm7, 1.0, %v1703_v53  ;;  %vm663_vm0 = vmand %vm1945_vm11, %vm662_vm1  ;;  %vm1023_vm11 = vcmp.ne.s32.totalorder %v1022_v21, 0  ;;  %v746_v21 = vmax.f32 %v744_v55, 0.0 }
 0x390   : > { %v963_v47 = vpop.permute.xlu0 %962 }
 0x391   : > { %vm964_vm9 = vcmp.ne.s32.totalorder %v963_v47, 0  ;;  %v823_v12 = vpop.permute.xlu1 %822 }
 0x392   : > { %vm2129_vm4 = vmand %vm2100_vm5, %vm964_vm9  ;;  %v825_v15 = vmul.f32 %v1396_v14, %v823_v12  ;;  %vm667_vm5 = vcmp.ne.s32.totalorder %v666_v46, 0  ;;  %v800_v46 = vsub.f32 %v1912_v4, %v798_v25  ;;  %v869_v12 = vsub.f32 %v1916_v6, %v2152_v26 }
 0x393   : > { %970 = vperm.xlu2 %1588, %v2040_v28   ;;  %vm668_vm3 = vmand %vm663_vm0, %vm667_vm5  ;;  %v1399_v29 = vsel %vm2129_vm4, 1.0, %v1703_v53 }
 0x394   : > { %1587 = vset.pattern.permute.xlu1 %v1701_v1  ;;  %v1394_v19 = vsel %vm668_vm3, 1.0, %v1703_v53  ;;  %v802_v56 = vand.u32 2147483647, %v800_v46 }
 0x395   : > { %925 = vperm.xlu1 %1587, %v1982_v60  }
 0x398   : > { %v1017_v58 = vpop.permute.xlu0 %1016 }
 0x399   : > { %v939_v16 = vpop.permute.xlu1 %938  ;;  %vm1018_vm2 = vcmp.ne.s32.totalorder %v1017_v58, 0 }
 0x39a   : > { %v941_v18 = vmul.f32 %v1398_v17, %v939_v16  ;;  %vm1019_vm6 = vmand %vm2002_vm8, %vm1018_vm2  ;;  %vm731_vm8 = vcmp.ne.s32.totalorder %v2093_v48, 0  ;;  %v691_v16 = vand.u32 2147483647, %v689_v42 }
 0x39b   : > { %828 = vperm.xlu2 %1588, %v825_v15   ;;  %vm1024_vm13 = vmand %vm1019_vm6, %vm1023_vm11 }
 0x39c   : > { %v1400_v23 = vsel %vm1024_vm13, 1.0, %v1703_v53  ;;  %vm732_vm9 = vmand %vm2020_vm12, %vm731_vm8  ;;  %vm2359_vm12 = vcmask 261120  }
 0x39d   : > { %982 = vperm.xlu1 %1587, %v2040_v28   ;;  %v1395_v33 = vsel %vm732_vm9, 1.0, %v1703_v53 }
 0x3a0   : > { %v700_v60 = vpop.permute.xlu0 %699 }
 0x3a1   : > { %v702_v20 = vmul.f32 %v1394_v19, %v700_v60  ;;  %v1055_v22 = vpop.permute.xlu1 %1054 }
 0x3a2   : > { %v1057_v24 = vmul.f32 %v1400_v23, %v1055_v22 }
 0x3a5   : > { %1589 = vset.pattern.permute.xlu1 %v1700_v0 }
 0x3a6   : > { %705 = vperm.xlu1 %1589, %v702_v20  }
 0x3ae   : > { %1029 = vperm.xlu1 %1589, %v1995_v3  }
 0x3b6   : > { %1591 = vset.pattern.permute.xlu1 %v1701_v1 }
 0x3b7   : > { %1098 = vperm.xlu1 %1591, %v2054_v35   ;;  %v1079_v35 = vpop.permute.xlu0 %1078 }
 0x3b8   : > { %vm1080_vm14 = vcmp.ne.s32.totalorder %v1079_v35, 0 }
 0x3b9   : > { %vm1081_vm4 = vmand %vm2110_vm15, %vm1080_vm14 }
 0x3ba   : > { %v1401_v13 = vsel %vm1081_vm4, 1.0, %v1703_v53  ;;  %v801_v53 = vsub.f32 %v1914_v5, %v798_v25  ;;  %v692_v25 = vsub.f32 1.0, %v690_v62 }
 0x3bc   : > { %v803_v63 = vand.u32 2147483647, %v801_v53 }
 0x3be   : > { %v805_v22 = vsub.f32 1.0, %v803_v63 }
 0x3bf   : > { %1593 = vset.pattern.permute.xlu1 %v1700_v0  ;;  %v810_v39 = vpop.permute.xlu0 %809 }
 0x3c0   : > { %1060 = vperm.xlu1 %1593, %v1057_v24   ;;  %v812_v57 = vsub.f32 %v1916_v6, %v810_v39  ;;  %v813_v59 = vsub.f32 %v1918_v7, %v810_v39  ;;  %v871_v24 = vand.u32 2147483647, %v869_v12  ;;  %v694_v39 = vmax.f32 %v692_v25, 0.0 }
 0x3c2   : > { %v814_v60 = vand.u32 2147483647, %v812_v57  ;;  %v815_v19 = vand.u32 2147483647, %v813_v59 }
 0x3d5   : > { %v880_v27 = vpop.permute.xlu2 %879 }
 0x3d6   : > { %v882_v28 = vmul.f32 %v1397_v9, %v880_v27 }
 0x3d8   : > { %885 = vperm.xlu0 %1584, %v882_v28  }
 0x3dd   : > { %v996_v30 = vpop.permute.xlu2 %995 }
 0x3de   : > { %v998_v31 = vmul.f32 %v1399_v29, %v996_v30  ;;  %v693_v29 = vsub.f32 1.0, %v691_v16 }
 0x3e0   : > { %1001 = vperm.xlu0 %1584, %v998_v31   ;;  %v695_v44 = vmax.f32 %v693_v29, 0.0 }
 0x3e5   : > { %v1112_v36 = vpop.permute.xlu2 %1111 }
 0x3e6   : > { %v1114_v37 = vmul.f32 %v1401_v13, %v1112_v36 }
 0x3ed   : > { %v764_v32 = vpop.permute.xlu1 %763  ;;  %v2180_v49 = vpop.permute.xlu2 %970 }
 0x3ee   : > { %v766_v34 = vmul.f32 %v1395_v33, %v764_v32 }
 0x3f0   : > { %769 = vperm.xlu2 %1588, %v766_v34   ;;  %v816_v34 = vsub.f32 1.0, %v814_v60 }
 0x3f5   : > { %v750_v38 = vpop.permute.xlu1 %749  ;;  %v2196_v30 = vpop.permute.xlu2 %828 }
 0x3f6   : > { %v752_v51 = vsub.f32 %v1916_v6, %v750_v38  ;;  %v753_v52 = vsub.f32 %v1918_v7, %v750_v38 }
 0x3f8   : > { %1590 = vset.pattern.permute.xlu2 %v1701_v1  ;;  %v674_v1 = vpop.permute.xlu0 %673  ;;  %v754_v14 = vand.u32 2147483647, %v752_v51  ;;  %v755_v58 = vand.u32 2147483647, %v753_v52  ;;  %v818_v51 = vmax.f32 %v816_v34, 0.0 }
 0x3f9   : > { %1041 = vperm.xlu2 %1590, %v1995_v3   ;;  %v676_v45 = vsub.f32 %v1912_v4, %v674_v1  ;;  %v677_v48 = vsub.f32 %v1914_v5, %v674_v1 }
 0x3fa   : > { %v756_v9 = vsub.f32 1.0, %v754_v14  ;;  %v757_v27 = vsub.f32 1.0, %v755_v58 }
 0x3fb   : > { %v678_v61 = vand.u32 2147483647, %v676_v45  ;;  %v679_v8 = vand.u32 2147483647, %v677_v48 }
 0x3fc   : > { %v758_v1 = vmax.f32 %v756_v9, 0.0  ;;  %v759_v41 = vmax.f32 %v757_v27, 0.0 }
 0x3fd   : > { %v680_v20 = vsub.f32 1.0, %v678_v61  ;;  %v681_v23 = vsub.f32 1.0, %v679_v8  ;;  %v973_v61 = vsub.f32 %v1912_v4, %v2180_v49 }
 0x3fe   : > { %v855_v2 = vpop.permute.xlu1 %854  ;;  %v760_v63 = vmul.f32 %v758_v1, %v746_v21 }
 0x3ff   : > { %v857_v10 = vsub.f32 %v1912_v4, %v855_v2  ;;  %v858_v17 = vsub.f32 %v1914_v5, %v855_v2  ;;  %v682_v35 = vmax.f32 %v680_v20, 0.0  ;;  %v683_v13 = vmax.f32 %v681_v23, 0.0 }
 0x400   : > { %v914_v11 = vpop.permute.xlu0 %913  ;;  %v807_v2 = vmax.f32 %v805_v22, 0.0 }
 0x401   : > { %1592 = vset.pattern.permute.xlu2 %v1700_v0  ;;  %v741_v0 = vsub.f32 %v1914_v5, %v738_v43  ;;  %v804_v43 = vsub.f32 1.0, %v802_v56  ;;  %v859_v31 = vand.u32 2147483647, %v857_v10  ;;  %v860_v32 = vand.u32 2147483647, %v858_v17 }
 0x402   : > { %944 = vperm.xlu2 %1592, %v941_v18   ;;  %v870_v18 = vsub.f32 %v1918_v7, %v2152_v26  ;;  %v817_v26 = vsub.f32 1.0, %v815_v19  ;;  %v917_v38 = vsub.f32 %v1914_v5, %v914_v11  ;;  %v697_v59 = vmul.f32 %v695_v44, %v683_v13 }
 0x403   : > { %v743_v54 = vand.u32 2147483647, %v741_v0  ;;  %v806_v36 = vmax.f32 %v804_v43, 0.0  ;;  %v873_v0 = vsub.f32 1.0, %v871_v24  ;;  %v861_v46 = vsub.f32 1.0, %v859_v31 }
 0x404   : > { %v872_v33 = vand.u32 2147483647, %v870_v18  ;;  %v862_v53 = vsub.f32 1.0, %v860_v32  ;;  %v819_v52 = vmax.f32 %v817_v26, 0.0  ;;  %v2206_v55 = vand.u32 2147483647, %v917_v38 }
 0x405   : > { %v745_v15 = vsub.f32 1.0, %v743_v54  ;;  %v696_v54 = vmul.f32 %v694_v39, %v682_v35  ;;  %v875_v18 = vmax.f32 %v873_v0, 0.0  ;;  %v820_v20 = vmul.f32 %v818_v51, %v806_v36 }
 0x406   : > { %v874_v50 = vsub.f32 1.0, %v872_v33  ;;  %v864_v12 = vmax.f32 %v862_v53, 0.0  ;;  %v921_v24 = vsub.f32 1.0, %v2206_v55  ;;  %v821_v25 = vmul.f32 %v819_v52, %v807_v2 }
 0x407   : > { %v2170_v40 = vpop.permute.xlu1 %925  ;;  %v747_v28 = vmax.f32 %v745_v15, 0.0  ;;  %v831_v38 = vmul.f32 %v2196_v30, %v820_v20 }
 0x408   : > { %v2200_v45 = vpop.permute.xlu0 %1086  ;;  %v928_v62 = vsub.f32 %v1916_v6, %v2170_v40  ;;  %v929_v14 = vsub.f32 %v1918_v7, %v2170_v40  ;;  %v876_v60 = vmax.f32 %v874_v50, 0.0  ;;  %v975_v40 = vand.u32 2147483647, %v973_v61 }
 0x409   : > { %v761_v8 = vmul.f32 %v759_v41, %v747_v28  ;;  %v1090_v31 = vsub.f32 %v1914_v5, %v2200_v45  ;;  %v832_v2 = vmul.f32 %v2196_v30, %v821_v25 }
 0x40a   : > { %1117 = vperm.xlu2 %1592, %v1114_v37   ;;  %v916_v37 = vsub.f32 %v1912_v4, %v914_v11  ;;  %v863_v11 = vmax.f32 %v861_v46, 0.0  ;;  %v931_v27 = vand.u32 2147483647, %v929_v14  ;;  %v878_v29 = vmul.f32 %v876_v60, %v864_v12 }
 0x40b   : > { %v923_v12 = vmax.f32 %v921_v24, 0.0 }
 0x40c   : > { %v2204_v42 = vand.u32 2147483647, %v916_v37  ;;  %v877_v28 = vmul.f32 %v875_v18, %v863_v11  ;;  %v977_v37 = vsub.f32 1.0, %v975_v40  ;;  %v933_v41 = vsub.f32 1.0, %v931_v27 }
 0x40e   : > { %v920_v23 = vsub.f32 1.0, %v2204_v42 }
 0x40f   : > { %v2172_v3 = vpop.permute.xlu1 %982 }
 0x410   : > { %v985_v57 = vsub.f32 %v1916_v6, %v2172_v3  ;;  %v986_v56 = vsub.f32 %v1918_v7, %v2172_v3  ;;  %v974_v3 = vsub.f32 %v1914_v5, %v2180_v49  ;;  %v1089_v49 = vsub.f32 %v1912_v4, %v2200_v45 }
 0x412   : > { %v987_v19 = vand.u32 2147483647, %v985_v57  ;;  %v988_v21 = vand.u32 2147483647, %v986_v56  ;;  %v976_v32 = vand.u32 2147483647, %v974_v3 }
 0x413   : > { %v935_v57 = vmax.f32 %v933_v41, 0.0  ;;  %v1091_v56 = vand.u32 2147483647, %v1089_v49 }
 0x414   : > { %v989_v33 = vsub.f32 1.0, %v987_v19  ;;  %v990_v26 = vsub.f32 1.0, %v988_v21  ;;  %v978_v46 = vsub.f32 1.0, %v976_v32 }
 0x415   : > { %v937_v3 = vmul.f32 %v935_v57, %v923_v12  ;;  %v1093_v19 = vsub.f32 1.0, %v1091_v56  ;;  %v1597_v57 = vld [vmem:[%s2309_s4 + $0x2] ss:$0 sm:$0xff] }
 0x416   : > { %v991_v53 = vmax.f32 %v989_v33, 0.0  ;;  %v992_v51 = vmax.f32 %v990_v26, 0.0  ;;  %v980_v11 = vmax.f32 %v978_v46, 0.0  ;;  %v1197_v46 = vld [vmem:[%s424_s19] sm:$0xff] }
 0x418   : > { %v706_v47 = vpop.permute.xlu1 %705 }
 0x419   : > { %v708_v15 = vmul.f32 %v706_v47, %v696_v54  ;;  %v709_v16 = vmul.f32 %v706_v47, %v697_v59  ;;  %v930_v47 = vand.u32 2147483647, %v928_v62 }
 0x41b   : > { %v932_v1 = vsub.f32 1.0, %v930_v47 }
 0x420   : > { %v2202_v48 = vpop.permute.xlu1 %1029 }
 0x421   : > { %v1032_v35 = vsub.f32 %v1912_v4, %v2202_v48  ;;  %v1033_v39 = vsub.f32 %v1914_v5, %v2202_v48  ;;  %v934_v48 = vmax.f32 %v932_v1, 0.0 }
 0x423   : > { %v1034_v52 = vand.u32 2147483647, %v1032_v35  ;;  %v1035_v42 = vand.u32 2147483647, %v1033_v39 }
 0x429   : > { %v1099_v34 = vpop.permute.xlu1 %1098 }
 0x42a   : > { %v1101_v0 = vsub.f32 %v1916_v6, %v1099_v34  ;;  %v1102_v44 = vsub.f32 %v1918_v7, %v1099_v34 }
 0x42c   : > { %v1103_v59 = vand.u32 2147483647, %v1101_v0  ;;  %v1104_v61 = vand.u32 2147483647, %v1102_v44  ;;  %v1200_v0 = vld [vmem:[%s424_s19 + $0x18] sm:$0xff]  ;;  %v1199_v44 = vld [vmem:[%s424_s19 + $0x10] sm:$0xff] }
 0x42d   : > { %1216 = vmatpush.msrb.mxu0 %v1200_v0 }
 0x42e   : > { %v1106_v18 = vsub.f32 1.0, %v1104_v61 }
 0x42f   : > { %1217 = vmatpush.msrb.mxu0 %v1199_v44 }
 0x44a   : > { %v770_v58 = vpop.permute.xlu2 %769  ;;  %v886_v9 = vpop.permute.xlu0 %885 }
 0x44b   : > { %v772_v10 = vmul.f32 %v770_v58, %v760_v63  ;;  %v773_v17 = vmul.f32 %v770_v58, %v761_v8  ;;  %v888_v36 = vmul.f32 %v886_v9, %v877_v28  ;;  %v889_v13 = vmul.f32 %v886_v9, %v878_v29 }
 0x44c   : > { %v1092_v63 = vand.u32 2147483647, %v1090_v31  ;;  %v979_v8 = vmax.f32 %v977_v37, 0.0  ;;  %v1036_v58 = vsub.f32 1.0, %v1034_v52  ;;  %v1108_v28 = vmax.f32 %v1106_v18, 0.0 }
 0x44d   : > { %v774_v43 = vadd.f32 %v772_v10, %v708_v15  ;;  %v775_v22 = vadd.f32 %v773_v17, %v709_v16  ;;  %v890_v54 = vadd.f32 %v888_v36, %v831_v38  ;;  %v891_v30 = vadd.f32 %v889_v13, %v832_v2  ;;  %v1061_v36 = vpop.permute.xlu1 %1060 }
 0x44e   : > { %v1037_v15 = vsub.f32 1.0, %v1035_v42  ;;  %v993_v16 = vmul.f32 %v991_v53, %v979_v8  ;;  %v994_v10 = vmul.f32 %v992_v51, %v980_v11  ;;  %v1105_v17 = vsub.f32 1.0, %v1103_v59  ;;  %v1596_v42 = vld [vmem:[%s2309_s4 + $0x1] ss:$0 sm:$0xff] }
 0x44f   : > { %1140 = vmatmul.f32.vlgmr.msra.gmra.mxu3 %v774_v43  ;;  %1169 = vmatmul.f32.vlgmr.msra.gmra.mxu2 %v775_v22  ;;  %v1094_v20 = vsub.f32 1.0, %v1092_v63  ;;  %v1038_v9 = vmax.f32 %v1036_v58, 0.0  ;;  %v1095_v31 = vmax.f32 %v1093_v19, 0.0  ;;  %v1598_v63 = vld [vmem:[%s2309_s4 + $0x3] ss:$0 sm:$0xff] }
 0x450   : > { %v1039_v47 = vmax.f32 %v1037_v15, 0.0  ;;  %v1107_v27 = vmax.f32 %v1105_v17, 0.0 }
 0x451   : > { %v1096_v32 = vmax.f32 %v1094_v20, 0.0 }
 0x452   : > { %v1109_v26 = vmul.f32 %v1107_v27, %v1095_v31 }
 0x453   : > { %v1042_v45 = vpop.permute.xlu2 %1041  ;;  %v1110_v35 = vmul.f32 %v1108_v28, %v1096_v32 }
 0x454   : > { %v1044_v4 = vsub.f32 %v1916_v6, %v1042_v45  ;;  %v1045_v50 = vsub.f32 %v1918_v7, %v1042_v45  ;;  %v922_v6 = vmax.f32 %v920_v23, 0.0  ;;  %v1002_v7 = vpop.permute.xlu0 %1001  ;;  %v1198_v45 = vld [vmem:[%s424_s19 + $0x8] sm:$0xff] }
 0x455   : > { %v1004_v21 = vmul.f32 %v1002_v7, %v993_v16  ;;  %v1005_v43 = vmul.f32 %v1002_v7, %v994_v10  ;;  %1218 = vmatpush.msrb.mxu0 %v1198_v45 }
 0x456   : > { %v1046_v55 = vand.u32 2147483647, %v1044_v4  ;;  %v1047_v5 = vand.u32 2147483647, %v1045_v50  ;;  %v936_v60 = vmul.f32 %v934_v48, %v922_v6 }
 0x457   : > { %1143 = vmatmul.f32.gmra.mxu3 %v890_v54  ;;  %1172 = vmatmul.f32.gmra.mxu2 %v891_v30 }
 0x458   : > { %v1048_v62 = vsub.f32 1.0, %v1046_v55  ;;  %v1049_v14 = vsub.f32 1.0, %v1047_v5  ;;  %1219 = vmatpush.msrb.mxu0 %v1197_v46  ;;  %v1595_v5 = vld [vmem:[%s2309_s4] ss:$0 sm:$0xff] }
 0x45a   : > { %v1050_v40 = vmax.f32 %v1048_v62, 0.0  ;;  %v1051_v25 = vmax.f32 %v1049_v14, 0.0 }
 0x45c   : > { %v945_v22 = vpop.permute.xlu2 %944  ;;  %v1052_v33 = vmul.f32 %v1050_v40, %v1038_v9  ;;  %v1053_v34 = vmul.f32 %v1051_v25, %v1039_v47 }
 0x45d   : > { %v947_v23 = vmul.f32 %v945_v22, %v936_v60  ;;  %v948_v24 = vmul.f32 %v945_v22, %v937_v3 }
 0x45e   : > { %v1063_v2 = vmul.f32 %v1061_v36, %v1052_v33  ;;  %v1064_v39 = vmul.f32 %v1061_v36, %v1053_v34 }
 0x45f   : > { %v1006_v29 = vadd.f32 %v1004_v21, %v947_v23  ;;  %v1007_v49 = vadd.f32 %v1005_v43, %v948_v24 }
 0x461   : > { %1146 = vmatmul.f32.gmra.mxu3 %v1006_v29  ;;  %1175 = vmatmul.f32.gmra.mxu2 %v1007_v49 }
 0x464   : > { %v1118_v13 = vpop.permute.xlu2 %1117 }
 0x465   : > { %v1120_v37 = vmul.f32 %v1118_v13, %v1109_v26  ;;  %v1121_v38 = vmul.f32 %v1118_v13, %v1110_v35 }
 0x467   : > { %v1122_v1 = vadd.f32 %v1120_v37, %v1063_v2  ;;  %v1123_v41 = vadd.f32 %v1121_v38, %v1064_v39 }
 0x469   : > { %1149 = vmatmul.f32.gmra.mxu3 %v1122_v1  ;;  %1178 = vmatmul.f32.gmra.mxu2 %v1123_v41 }
 0x4d2   : > { %v1141_v53 = vpop.f32.mrf.mxu3  ;;  %v1170_v4 = vpop.f32.mrf.mxu2 }
 0x4d3   : > { %v1171_v55 = vadd.f32 %v1170_v4, %v1141_v53 }
 0x4d5   : > { %v1184_v61 = vmul.f32 %v1595_v5, %v1171_v55 }
 0x4da   : > { %v1144_v50 = vpop.f32.mrf.mxu3  ;;  %v1173_v51 = vpop.f32.mrf.mxu2 }
 0x4db   : > { %v1174_v30 = vadd.f32 %v1173_v51, %v1144_v50 }
 0x4dd   : > { %v1187_v59 = vmul.f32 %v1596_v42, %v1174_v30 }
 0x4df   : > { %v1188_v6 = vadd.f32 %v1187_v59, %v1184_v61 }
 0x4e4   : > { %v1147_v52 = vpop.f32.mrf.mxu3  ;;  %v1176_v54 = vpop.f32.mrf.mxu2 }
 0x4e5   : > { %v1177_v48 = vadd.f32 %v1176_v54, %v1147_v52 }
 0x4e7   : > { %v1191_v56 = vmul.f32 %v1597_v57, %v1177_v48 }
 0x4e9   : > { %v1192_v7 = vadd.f32 %v1191_v56, %v1188_v6 }
 0x4ec   : > { %v1150_v8 = vpop.f32.mrf.mxu3  ;;  %v1179_v11 = vpop.f32.mrf.mxu2 }
 0x4ed   : > { %v1180_v12 = vadd.f32 %v1179_v11, %v1150_v8 }
 0x4ef   : > { %v1195_v62 = vmul.f32 %v1598_v63, %v1180_v12 }
 0x4f1   : > { %v1196_v14 = vadd.f32 %v1195_v62, %v1192_v7 }
 0x4f3   : > { %1402 = vmatmul.msk.f32.vlgmr.msrb.gmra.mxu0 %vm2359_vm12, %v1196_v14 }
 0x56c   : > { %1227 = sbr.rel (%p1403_p0) target bundleno = 1397 (0x575), region = 60 }
 0x570   : > { %v1221_v58 = vpop.f32.mrf.mxu0 }
 0x571   : > { %v1603_v15 = vld [vmem:[%s2313_s8] ss:$0 sm:$0xff]  ;;  %vm2360_vm15 = vcmask 261120  }
 0x572   : > { %v1232_v16 = vadd.f32 %v1603_v15, %v1221_v58 }
 0x574   : > { %1233 = vst.msk [vmem:[%s398_s29] sm:$0xff] %vm2360_vm15, %v1232_v16 }
 0x575 PF: > { %p1404_p1 = scmp.eq.s32.totalorder %s1682_s12, 0 }
 0x577   : > { %1237 = sbr.rel (%p1404_p1) target bundleno = 1408 (0x580), region = 64 }
 0x57c   : > { %v1238_v10 = vld [vmem:[%s398_s29] sm:$0xff]  ;;  %vm2361_vm10 = vcmask 261120  }
 0x57d   : > { %v1239_v17 = vadd.f32 %v1238_v10, %v1221_v58 }
 0x57f   : > { %1240 = vst.msk [vmem:[%s398_s29] sm:$0xff] %vm2361_vm10, %v1239_v17 }
 0x580 PF: > { %s1406_s28 = sshll.u32 %s1686_s13, 3  ;;  %s1254_s23 = sshll.u32 %s398_s29, 4  ;;  %s1255_s23 = int_to_ptr.vmem [resolvable:$true] %s1254_s23 }
 0x581   : > { %s1252_s18 = scalar_lea.hbm %s2314_s9, %s1406_s28  ;;  %s2362_s1 = sand.u32 1, %s1674_s10  }
 0x582   : > { %s1256_s24 = sshll.u32 %s1252_s18, 4  ;;  %s1242_s12 = scalar_lea.sflag [#allocation3], %s2362_s1  ;;  %s1257_s24 = int_to_ptr.hbm [resolvable:$true] %s1256_s24 }
 0x583   : > { %s1618_s26 = sshra.s32 %s1257_s24, 4  ;;  %s1624_s13 = scalar_lea.hbm %s2314_s9, 16  ;;  %s1619_s26 = int_to_ptr.hbm [resolvable:$true] %s1618_s26 }
 0x584   : > { %s1620_s19 = scalar_lea.hbm %s1619_s26, 8  ;;  %p1625_p6 = scmp.lt.s32.totalorder %s1619_s26, %s2314_s9 }
 0x585   : > { %p1621_p2 = scmp.ne.s32.totalorder %s1619_s26, %s1620_s19  ;;  %p1626_p7 = scmp.lt.s32.totalorder %s1624_s13, %s1620_s19 }
 0x587   : > { %p1622_p4 = pnand %p1621_p2, %p1819_p3  ;;  %p1627_p8 = por %p1626_p7, %p1625_p6 }
 0x589   : > { %p1623_p5 = pneg %p1622_p4 }
 0x58b   : > { %p1628_p10 = pnand %p1627_p8, %p1623_p5 }
 0x58d   : > { %1631 = shalt.err (!%p1628_p10)
}
 0x58e   : > { %1489 = dma.vmem_to_hbm [thread:$0]  (%p1819_p3), %s1255_s23, 128, %s1257_s24, %s1242_s12  }
 0x58f PF: > { %p1495_p11 = scmp.ge.s32.totalorder %s1698_s16, 2  ;;  %s1268_s29 = sand.u32 1, %s1670_s30  }
 0x590   : > { %s1269_s0 = scalar_lea.sflag [#allocation3], %s1268_s29 }
 0x591   : > { %p1492_p12 = pnand %p1495_p11, %p1829_p9 }
 0x593   : > { %p1493_p13 = pneg %p1492_p12 }
 0x595   : > { %1665 = dma.done.wait (%p1493_p13), %s1269_s0, 128  }
 0x596   : > { %1667 = vsyncadd (%p1493_p13), %s1269_s0, 4294967168  ;;  %s22_s16 = sadd.s32 1, %s1698_s16   ;;  %s2363_s2 = sld [smem:[#allocation5_spill]] }
 0x597   : > { %p19_p0 = scmp.ge.s32.totalorder %s22_s16, 6   ;;  %s2364_s21 = sld [smem:[#allocation6_spill]] }
 0x598   : > { %s2365_s30 = smov %s1674_s10  ;;  %s2366_s10 = smov %s1678_s11 }
 0x599   : > { %s2367_s11 = smov %s1837_s25  ;;  %s2368_s12 = smov %s1690_s14 }
 0x59a   : > { %s2369_s13 = smov %s1694_s15  ;;  %21 = sbr.rel (!%p19_p0) target bundleno = 9 (0x9), region = 108 }
 0x59c   : > { %s2370_s14 = smov %s2363_s2 }
 0x59d   : > { %s2371_s15 = smov %s2364_s21 }
 0x59f   :  { %1275 = vsyncpa [#allocation3], 1 }
 0x5a0   :  { %1277 = vsyncpa [#allocation3 + $0x1], 1 }

</bundles_post_ra>
